<compile_context>
chip_gen: v7x
topology: tpu7x:2x2x1
jax: 0.10.0
libtpu: 0.0.40
codegen_flags: <defaults>
</compile_context>

<pallas_src>
from math import sqrt

import jax
import jax.numpy as jnp
from jax.experimental import pallas as pl
from jax.experimental.pallas import tpu as pltpu

LANE = 128   # TPU vreg lane width
SUB = 8      # sublane granularity
F32 = jnp.float32
BF16 = jnp.bfloat16


def _round_up(x, m):
    return ((x + m - 1) // m) * m


def _pad2d(a, rows, cols):
    r, c = a.shape
    if r == rows and c == cols:
        return a
    return jnp.zeros((rows, cols), a.dtype).at[:r, :c].set(a)


def _has_256_mxu():
    """True on chips with a 256x256 MXU (v6e / v7x) where a block-diagonal second-layer merge
    halves MXU issue count; False (keep two 128-wide matmuls) on 128x128-MXU chips (<= v5e)."""
    try:
        kind = jax.devices()[0].device_kind.lower()
    except Exception:
        return False
    return ("v6" in kind) or ("v7" in kind) or ("trillium" in kind)


class _Slab:
    """Row-concatenates 2-D blocks into one fixed-width slab (a single DMA into VMEM).

    Each block is zero-padded to the slab width and its stored row count is rounded up to a
    multiple of 8, so every recorded offset stays sublane-aligned.  add() returns the static
    (offset, rows, cols) triple used for slicing inside the kernel."""

    def __init__(self, width, dtype):
        self.width = width
        self.dtype = dtype
        self.blocks = []
        self.off = 0

    def add(self, a):
        r, c = a.shape
        rp = _round_up(max(r, 1), SUB)
        self.blocks.append(_pad2d(a.astype(self.dtype), rp, self.width))
        entry = (self.off, r, c)
        self.off += rp
        return entry

    def finalize(self):
        if not self.blocks:
            return jnp.zeros((SUB, self.width), self.dtype)
        return jnp.concatenate(self.blocks, axis=0)


def _build_kernel(plan, dpad, merge_l2, compute_dtype):
    """kernel(w_slab, b_slab, f_slab, a_slab, out) unrolling all message-passing levels in VMEM."""

    def kernel(w_ref, b_ref, f_ref, a_ref, out_ref):
        def dot(a, b):
            return jnp.dot(a, b, preferred_element_type=jnp.float32)

        def cast(v):                      # MXU operand dtype; accumulation stays f32
            return v.astype(compute_dtype)

        def ldw(e):
            off, r, c = e
            return w_ref[off:off + r, :c]

        def ldb(e):
            off, r, c = e
            return b_ref[off:off + r, :c]

        def ldf(e):
            off, r, c = e
            return f_ref[off:off + r, :]

        def lda(e):
            off, r, c = e
            return a_ref[off:off + r, :c]

        x = None
        for s in plan:  # unrolled at trace time; every slab offset is a Python int (static slices)
            if s["kind"] == "merged":     # both MLPs read the same activation -> merged 1st layer
                h = cast(x) if s["h_from_x"] else ldf(s["h"])
                z = jnp.maximum(dot(h, ldw(s["w1"])) + ldb(s["b1"]), 0.0)
                if merge_l2:              # v6e/v7x: one block-diagonal 256-wide 2nd-layer matmul
                    y = dot(cast(z), ldw(s["w2"])) + ldb(s["b2"])
                    ya, yb = y[:, :dpad], y[:, dpad:]
                else:                     # v5e: two separate 128-wide 2nd-layer matmuls
                    zc = cast(z)
                    ya = dot(zc[:, :dpad], ldw(s["w2a"])) + ldb(s["b2a"])
                    yb = dot(zc[:, dpad:], ldw(s["w2b"])) + ldb(s["b2b"])
            else:                         # "split": MLP_A eats a feature matrix, MLP_B eats x
                za = jnp.maximum(dot(ldf(s["ha"]), ldw(s["a_w1"])) + ldb(s["a_b1"]), 0.0)
                ya = dot(cast(za), ldw(s["a_w2"])) + ldb(s["a_b2"])
                zb = jnp.maximum(dot(cast(x), ldw(s["b_w1"])) + ldb(s["b_b1"]), 0.0)
                yb = dot(cast(zb), ldw(s["b_w2"])) + ldb(s["b_b2"])
            x = ya + dot(lda(s["adj"]), cast(yb))
        out_ref[...] = x

    return kernel


def message_passing_forward(adj, features, fc1, fc2, radius, *,
                            compute_dtype=BF16, merge_l2=None):
    """Mirrors MessagePassing.forward (eval mode; nn.Dropout is identity)."""
    input_dim = features[0].shape[1]
    output_dim = fc1[0]["w2"].shape[1]
    dpad = _round_up(output_dim, LANE)          # padded MLP hidden/output width
    in_lpad = _round_up(input_dim, LANE)        # padded raw-feature width (lane-dense loads)

    if merge_l2 is None:
        merge_l2 = _has_256_mxu()

    wsl = _Slab(2 * dpad, compute_dtype)                                   # all weights
    bsl = _Slab(2 * dpad, F32)                                             # all biases (f32)
    fsl = _Slab(in_lpad, compute_dtype)                                    # stacked features
    asl = _Slab(_round_up(max(a.shape[1] for a in adj), LANE), compute_dtype)  # stacked adjacencies

    feat_entries = [fsl.add(f) for f in features]

    def pack_w1_merged(pa, pb, in_dim):
        w = jnp.concatenate([_pad2d(pa["w1"], in_dim, dpad),
                             _pad2d(pb["w1"], in_dim, dpad)], axis=1)
        b = jnp.concatenate([_pad2d(pa["b1"], 1, dpad),
                             _pad2d(pb["b1"], 1, dpad)], axis=1)
        return wsl.add(w), bsl.add(b)

    def pack_w2_pair(pa, pb):
        if merge_l2:
            w = jnp.zeros((2 * dpad, 2 * dpad), F32)
            w = w.at[:dpad, :dpad].set(_pad2d(pa["w2"], dpad, dpad))
            w = w.at[dpad:, dpad:].set(_pad2d(pb["w2"], dpad, dpad))
            b = jnp.concatenate([_pad2d(pa["b2"], 1, dpad),
                                 _pad2d(pb["b2"], 1, dpad)], axis=1)
            return dict(w2=wsl.add(w), b2=bsl.add(b))
        return dict(w2a=wsl.add(_pad2d(pa["w2"], dpad, dpad)),
                    b2a=bsl.add(_pad2d(pa["b2"], 1, dpad)),
                    w2b=wsl.add(_pad2d(pb["w2"], dpad, dpad)),
                    b2b=bsl.add(_pad2d(pb["b2"], 1, dpad)))

    def pack_mlp(p, in_dim, pfx):
        return {pfx + "w1": wsl.add(_pad2d(p["w1"], in_dim, dpad)),
                pfx + "b1": bsl.add(_pad2d(p["b1"], 1, dpad)),
                pfx + "w2": wsl.add(_pad2d(p["w2"], dpad, dpad)),
                pfx + "b2": bsl.add(_pad2d(p["b2"], 1, dpad))}

    plan, flops, rows = [], 0, None
    for i in range(2 * radius - 1, -1, -1):
        # TODO(synk): the adj[i].shape == (1, 1) "no adjacency" sentinel branch of the PyTorch
        # module is not modeled; real dense adjacency matrices are assumed at every level.
        # TODO(synk): training-mode dropout is not implemented (identity in eval mode).
        n_dst, n_src = adj[i].shape
        a_entry = asl.add(adj[i])
        if i == 2 * radius - 1:
            j = i // 2 + 1
            pa, pb = fc1[(i + 1) // 2], fc1[(i + 1) // 2 + 1]
            w1e, b1e = pack_w1_merged(pa, pb, in_lpad)
            lvl = dict(kind="merged", h_from_x=False, h=feat_entries[j], adj=a_entry,
                       w1=w1e, b1=b1e, **pack_w2_pair(pa, pb))
            hr = features[j].shape[0]
            flops += 2 * hr * in_lpad * 2 * dpad
            flops += 2 * hr * (2 * dpad) * (2 * dpad) if merge_l2 else 4 * hr * dpad * dpad
        elif i % 2 == 0:
            pa, pb = fc1[i // 2], fc2[i + i // 2]
            lvl = dict(kind="split", ha=feat_entries[i // 2], adj=a_entry,
                       **pack_mlp(pa, in_lpad, "a_"), **pack_mlp(pb, dpad, "b_"))
            na, nb = features[i // 2].shape[0], rows
            flops += 2 * na * (in_lpad + dpad) * dpad + 4 * nb * dpad * dpad
        else:
            pa, pb = fc2[i + (i - 1) // 2], fc2[i + (i - 1) // 2 + 1]
            w1e, b1e = pack_w1_merged(pa, pb, dpad)
            lvl = dict(kind="merged", h_from_x=True, adj=a_entry,
                       w1=w1e, b1=b1e, **pack_w2_pair(pa, pb))
            flops += 2 * rows * dpad * 2 * dpad
            flops += 2 * rows * (2 * dpad) * (2 * dpad) if merge_l2 else 4 * rows * dpad * dpad
        flops += 2 * n_dst * n_src * dpad
        plan.append(lvl)
        rows = n_dst
    n_out = rows

    args = [wsl.finalize(), bsl.finalize(), fsl.finalize(), asl.finalize()]
    in_bytes = sum(int(a.size) * a.dtype.itemsize for a in args)
    out_bytes = n_out * dpad * 4
    # Size VMEM from the real footprint (generous slack for intermediates); cap at 48 MiB so we
    # never claim the whole 64 MiB physical VMEM of a v7x TensorCore.
    vmem_limit = int(min(max(6 * (in_bytes + out_bytes), 16 * 1024 * 1024), 48 * 1024 * 1024))

    vmem = pl.BlockSpec(memory_space=pltpu.MemorySpace.VMEM)

    # TODO(synk): for graphs whose packed slabs outgrow VMEM, switch to a row-tiled grid
    # (dst rows "parallel", adjacency contraction as a trailing "arbitrary" axis with an f32
    # VMEM accumulator) and, on v5e, manually double-buffer per-level weight/adjacency loads.
    out = pl.pallas_call(
        _build_kernel(plan, dpad, merge_l2, compute_dtype),
        out_shape=jax.ShapeDtypeStruct((n_out, dpad), F32),
        in_specs=[vmem] * len(args),
        out_specs=vmem,
        compiler_params=pltpu.CompilerParams(vmem_limit_bytes=vmem_limit),
        cost_estimate=pl.CostEstimate(flops=int(flops), transcendentals=0,
                                      bytes_accessed=int(in_bytes + out_bytes)),
    )(*args)
    return out[:, :output_dim]


# ----------------------- parameter / input construction -----------------------

def init_mlp(key, in_dim, hid_dim, out_dim):
    """MLP(num_layers=2): Linear(in,hid) -> ReLU -> Linear(hid,out); PyTorch-style uniform init."""
    k1, k2, k3, k4 = jax.random.split(key, 4)
    stdv = 1.0 / sqrt(hid_dim)
    return dict(
        w1=jax.random.uniform(k1, (in_dim, hid_dim), F32, -stdv, stdv),
        b1=jax.random.uniform(k2, (1, hid_dim), F32, -stdv, stdv),
        w2=jax.random.uniform(k3, (hid_dim, out_dim), F32, -stdv, stdv),
        b2=jax.random.uniform(k4, (1, out_dim), F32, -stdv, stdv),
    )


def adj_shape(i, radius, n):
    if i == 2 * radius - 1:
        return (n[radius], n[radius])
    if i % 2 == 0:
        return (n[i // 2], n[i // 2 + 1])
    return (n[(i + 1) // 2], n[(i + 1) // 2])


# ---------------------------- pure-JAX reference ----------------------------
# Mirrors the kernel's numerics: bf16 matmul operands, f32 accumulation, f32 biases/elementwise.
# (The only deviation from the f32 PyTorch module is the bf16 operand rounding asked for by the
# perf review.)

def _mm(a, b):
    return jnp.dot(a.astype(BF16), b.astype(BF16), preferred_element_type=F32)


def _mlp_ref(p, x):
    return _mm(jnp.maximum(_mm(x, p["w1"]) + p["b1"], 0.0), p["w2"]) + p["b2"]


def _ref_forward(adj, features, fc1, fc2, radius):
    l = [features[i] for i in range(radius + 1)]
    x = None
    for i in range(2 * radius - 1, -1, -1):
        if i == 2 * radius - 1:
            h = l[i // 2 + 1]
            x = _mlp_ref(fc1[(i + 1) // 2], h) + _mm(adj[i], _mlp_ref(fc1[(i + 1) // 2 + 1], h))
        elif i % 2 == 0:
            x = _mlp_ref(fc1[i // 2], l[i // 2]) + _mm(adj[i], _mlp_ref(fc2[i + i // 2], x))
        else:
            x = _mlp_ref(fc2[i + (i - 1) // 2], x) + _mm(adj[i], _mlp_ref(fc2[i + (i - 1) // 2 + 1], x))
    return x


if __name__ == "__main__":
    key = jax.random.PRNGKey(0)
    radius = 2
    input_dim = 16
    output_dim = 32
    n = [64, 48, 32]  # node counts at coarsening levels 0..radius

    keys = iter(jax.random.split(key, 64))

    features = [jax.random.normal(next(keys), (n[i], input_dim), F32)
                for i in range(radius + 1)]

    adj = []
    for i in range(2 * radius):
        a = jax.random.uniform(next(keys), adj_shape(i, radius, n), F32)
        # mimic a sparse adjacency by thresholding (kept dense for the kernel's spmm)
        adj.append(jnp.where(a > 0.7, a, 0.0))

    fc1 = [init_mlp(next(keys), input_dim, output_dim, output_dim)
           for _ in range(radius + 2)]
    fc2 = [init_mlp(next(keys), output_dim, output_dim, output_dim)
           for _ in range(3 * radius - 2)]

    out = message_passing_forward(adj, features, fc1, fc2, radius)
    out = jax.block_until_ready(out)

    assert out.shape == (n[0], output_dim) and out.dtype == F32
    ref = _ref_forward(adj, features, fc1, fc2, radius)
    max_err = float(jnp.max(jnp.abs(out - ref)))
    assert jnp.allclose(out, ref, atol=1e-2, rtol=1e-2), f"max abs err = {max_err}"

    print("KERNEL_OK")
</pallas_src>

<mosaic_0001>
module attributes {stable_mosaic.version = 11 : i64} {
  func.func @kernel(%arg0: memref<1792x256xbf16, #tpu.memory_space<vmem>>, %arg1: memref<112x256xf32, #tpu.memory_space<vmem>>, %arg2: memref<144x128xbf16, #tpu.memory_space<vmem>>, %arg3: memref<192x128xbf16, #tpu.memory_space<vmem>>, %arg4: memref<64x128xf32, #tpu.memory_space<vmem>>) attributes {dimension_semantics = [], scalar_prefetch = 0 : i64, scratch_operands = 0 : i64, tpu.core_type = #tpu.core_type<tc>} {
    %c112 = arith.constant 112 : index
    %c0 = arith.constant 0 : index
    %0 = vector.load %arg2[%c112, %c0] : memref<144x128xbf16, #tpu.memory_space<vmem>>, vector<32x128xbf16>
    %c0_0 = arith.constant 0 : index
    %c0_1 = arith.constant 0 : index
    %1 = vector.load %arg0[%c0_0, %c0_1] : memref<1792x256xbf16, #tpu.memory_space<vmem>>, vector<128x256xbf16>
    %cst = arith.constant dense<0.000000e+00> : vector<32x256xf32>
    %2 = tpu.matmul %0, %1, %cst {dimension_numbers = #tpu.dot_dimension_numbers<[1], [0], [0], [1], [0, 0, 1, 1], [], []>} : vector<32x128xbf16>, vector<128x256xbf16>, vector<32x256xf32> -> vector<32x256xf32>
    %c0_2 = arith.constant 0 : index
    %c0_3 = arith.constant 0 : index
    %3 = vector.load %arg1[%c0_2, %c0_3] : memref<112x256xf32, #tpu.memory_space<vmem>>, vector<1x256xf32>
    %4 = vector.broadcast %3 : vector<1x256xf32> to vector<32x256xf32>
    %5 = arith.addf %2, %4 : vector<32x256xf32>
    %cst_4 = arith.constant 0.000000e+00 : f32
    %6 = vector.broadcast %cst_4 : f32 to vector<32x256xf32>
    %7 = arith.maximumf %5, %6 : vector<32x256xf32>
    %8 = arith.truncf %7 : vector<32x256xf32> to vector<32x256xbf16>
    %9 = vector.extract_strided_slice %8 {offsets = [0, 0], sizes = [32, 128], strides = [1, 1]} : vector<32x256xbf16> to vector<32x128xbf16>
    %c128 = arith.constant 128 : index
    %c0_5 = arith.constant 0 : index
    %10 = vector.load %arg0[%c128, %c0_5] : memref<1792x256xbf16, #tpu.memory_space<vmem>>, vector<128x128xbf16>
    %cst_6 = arith.constant dense<0.000000e+00> : vector<32x128xf32>
    %11 = tpu.matmul %9, %10, %cst_6 {dimension_numbers = #tpu.dot_dimension_numbers<[1], [0], [0], [1], [0, 0, 1, 1], [], []>} : vector<32x128xbf16>, vector<128x128xbf16>, vector<32x128xf32> -> vector<32x128xf32>
    %c8 = arith.constant 8 : index
    %c0_7 = arith.constant 0 : index
    %12 = vector.load %arg1[%c8, %c0_7] : memref<112x256xf32, #tpu.memory_space<vmem>>, vector<1x128xf32>
    %13 = vector.broadcast %12 : vector<1x128xf32> to vector<32x128xf32>
    %14 = arith.addf %11, %13 : vector<32x128xf32>
    %15 = vector.extract_strided_slice %8 {offsets = [0, 128], sizes = [32, 128], strides = [1, 1]} : vector<32x256xbf16> to vector<32x128xbf16>
    %c256 = arith.constant 256 : index
    %c0_8 = arith.constant 0 : index
    %16 = vector.load %arg0[%c256, %c0_8] : memref<1792x256xbf16, #tpu.memory_space<vmem>>, vector<128x128xbf16>
    %cst_9 = arith.constant dense<0.000000e+00> : vector<32x128xf32>
    %17 = tpu.matmul %15, %16, %cst_9 {dimension_numbers = #tpu.dot_dimension_numbers<[1], [0], [0], [1], [0, 0, 1, 1], [], []>} : vector<32x128xbf16>, vector<128x128xbf16>, vector<32x128xf32> -> vector<32x128xf32>
    %c16 = arith.constant 16 : index
    %c0_10 = arith.constant 0 : index
    %18 = vector.load %arg1[%c16, %c0_10] : memref<112x256xf32, #tpu.memory_space<vmem>>, vector<1x128xf32>
    %19 = vector.broadcast %18 : vector<1x128xf32> to vector<32x128xf32>
    %20 = arith.addf %17, %19 : vector<32x128xf32>
    %c0_11 = arith.constant 0 : index
    %c0_12 = arith.constant 0 : index
    %21 = vector.load %arg3[%c0_11, %c0_12] : memref<192x128xbf16, #tpu.memory_space<vmem>>, vector<32x32xbf16>
    %22 = arith.truncf %20 : vector<32x128xf32> to vector<32x128xbf16>
    %cst_13 = arith.constant dense<0.000000e+00> : vector<32x128xf32>
    %23 = tpu.matmul %21, %22, %cst_13 {dimension_numbers = #tpu.dot_dimension_numbers<[1], [0], [0], [1], [0, 0, 1, 1], [], []>} : vector<32x32xbf16>, vector<32x128xbf16>, vector<32x128xf32> -> vector<32x128xf32>
    %24 = arith.addf %14, %23 : vector<32x128xf32>
    %c64 = arith.constant 64 : index
    %c0_14 = arith.constant 0 : index
    %25 = vector.load %arg2[%c64, %c0_14] : memref<144x128xbf16, #tpu.memory_space<vmem>>, vector<48x128xbf16>
    %c384 = arith.constant 384 : index
    %c0_15 = arith.constant 0 : index
    %26 = vector.load %arg0[%c384, %c0_15] : memref<1792x256xbf16, #tpu.memory_space<vmem>>, vector<128x128xbf16>
    %cst_16 = arith.constant dense<0.000000e+00> : vector<48x128xf32>
    %27 = tpu.matmul %25, %26, %cst_16 {dimension_numbers = #tpu.dot_dimension_numbers<[1], [0], [0], [1], [0, 0, 1, 1], [], []>} : vector<48x128xbf16>, vector<128x128xbf16>, vector<48x128xf32> -> vector<48x128xf32>
    %c24 = arith.constant 24 : index
    %c0_17 = arith.constant 0 : index
    %28 = vector.load %arg1[%c24, %c0_17] : memref<112x256xf32, #tpu.memory_space<vmem>>, vector<1x128xf32>
    %29 = vector.broadcast %28 : vector<1x128xf32> to vector<48x128xf32>
    %30 = arith.addf %27, %29 : vector<48x128xf32>
    %cst_18 = arith.constant 0.000000e+00 : f32
    %31 = vector.broadcast %cst_18 : f32 to vector<48x128xf32>
    %32 = arith.maximumf %30, %31 : vector<48x128xf32>
    %33 = arith.truncf %32 : vector<48x128xf32> to vector<48x128xbf16>
    %c512 = arith.constant 512 : index
    %c0_19 = arith.constant 0 : index
    %34 = vector.load %arg0[%c512, %c0_19] : memref<1792x256xbf16, #tpu.memory_space<vmem>>, vector<128x128xbf16>
    %cst_20 = arith.constant dense<0.000000e+00> : vector<48x128xf32>
    %35 = tpu.matmul %33, %34, %cst_20 {dimension_numbers = #tpu.dot_dimension_numbers<[1], [0], [0], [1], [0, 0, 1, 1], [], []>} : vector<48x128xbf16>, vector<128x128xbf16>, vector<48x128xf32> -> vector<48x128xf32>
    %c32 = arith.constant 32 : index
    %c0_21 = arith.constant 0 : index
    %36 = vector.load %arg1[%c32, %c0_21] : memref<112x256xf32, #tpu.memory_space<vmem>>, vector<1x128xf32>
    %37 = vector.broadcast %36 : vector<1x128xf32> to vector<48x128xf32>
    %38 = arith.addf %35, %37 : vector<48x128xf32>
    %39 = arith.truncf %24 : vector<32x128xf32> to vector<32x128xbf16>
    %c640 = arith.constant 640 : index
    %c0_22 = arith.constant 0 : index
    %40 = vector.load %arg0[%c640, %c0_22] : memref<1792x256xbf16, #tpu.memory_space<vmem>>, vector<128x128xbf16>
    %cst_23 = arith.constant dense<0.000000e+00> : vector<32x128xf32>
    %41 = tpu.matmul %39, %40, %cst_23 {dimension_numbers = #tpu.dot_dimension_numbers<[1], [0], [0], [1], [0, 0, 1, 1], [], []>} : vector<32x128xbf16>, vector<128x128xbf16>, vector<32x128xf32> -> vector<32x128xf32>
    %c40 = arith.constant 40 : index
    %c0_24 = arith.constant 0 : index
    %42 = vector.load %arg1[%c40, %c0_24] : memref<112x256xf32, #tpu.memory_space<vmem>>, vector<1x128xf32>
    %43 = vector.broadcast %42 : vector<1x128xf32> to vector<32x128xf32>
    %44 = arith.addf %41, %43 : vector<32x128xf32>
    %cst_25 = arith.constant 0.000000e+00 : f32
    %45 = vector.broadcast %cst_25 : f32 to vector<32x128xf32>
    %46 = arith.maximumf %44, %45 : vector<32x128xf32>
    %47 = arith.truncf %46 : vector<32x128xf32> to vector<32x128xbf16>
    %c768 = arith.constant 768 : index
    %c0_26 = arith.constant 0 : index
    %48 = vector.load %arg0[%c768, %c0_26] : memref<1792x256xbf16, #tpu.memory_space<vmem>>, vector<128x128xbf16>
    %cst_27 = arith.constant dense<0.000000e+00> : vector<32x128xf32>
    %49 = tpu.matmul %47, %48, %cst_27 {dimension_numbers = #tpu.dot_dimension_numbers<[1], [0], [0], [1], [0, 0, 1, 1], [], []>} : vector<32x128xbf16>, vector<128x128xbf16>, vector<32x128xf32> -> vector<32x128xf32>
    %c48 = arith.constant 48 : index
    %c0_28 = arith.constant 0 : index
    %50 = vector.load %arg1[%c48, %c0_28] : memref<112x256xf32, #tpu.memory_space<vmem>>, vector<1x128xf32>
    %51 = vector.broadcast %50 : vector<1x128xf32> to vector<32x128xf32>
    %52 = arith.addf %49, %51 : vector<32x128xf32>
    %c32_29 = arith.constant 32 : index
    %c0_30 = arith.constant 0 : index
    %53 = vector.load %arg3[%c32_29, %c0_30] : memref<192x128xbf16, #tpu.memory_space<vmem>>, vector<48x32xbf16>
    %54 = arith.truncf %52 : vector<32x128xf32> to vector<32x128xbf16>
    %cst_31 = arith.constant dense<0.000000e+00> : vector<48x128xf32>
    %55 = tpu.matmul %53, %54, %cst_31 {dimension_numbers = #tpu.dot_dimension_numbers<[1], [0], [0], [1], [0, 0, 1, 1], [], []>} : vector<48x32xbf16>, vector<32x128xbf16>, vector<48x128xf32> -> vector<48x128xf32>
    %56 = arith.addf %38, %55 : vector<48x128xf32>
    %57 = arith.truncf %56 : vector<48x128xf32> to vector<48x128xbf16>
    %c896 = arith.constant 896 : index
    %c0_32 = arith.constant 0 : index
    %58 = vector.load %arg0[%c896, %c0_32] : memref<1792x256xbf16, #tpu.memory_space<vmem>>, vector<128x256xbf16>
    %cst_33 = arith.constant dense<0.000000e+00> : vector<48x256xf32>
    %59 = tpu.matmul %57, %58, %cst_33 {dimension_numbers = #tpu.dot_dimension_numbers<[1], [0], [0], [1], [0, 0, 1, 1], [], []>} : vector<48x128xbf16>, vector<128x256xbf16>, vector<48x256xf32> -> vector<48x256xf32>
    %c56 = arith.constant 56 : index
    %c0_34 = arith.constant 0 : index
    %60 = vector.load %arg1[%c56, %c0_34] : memref<112x256xf32, #tpu.memory_space<vmem>>, vector<1x256xf32>
    %61 = vector.broadcast %60 : vector<1x256xf32> to vector<48x256xf32>
    %62 = arith.addf %59, %61 : vector<48x256xf32>
    %cst_35 = arith.constant 0.000000e+00 : f32
    %63 = vector.broadcast %cst_35 : f32 to vector<48x256xf32>
    %64 = arith.maximumf %62, %63 : vector<48x256xf32>
    %65 = arith.truncf %64 : vector<48x256xf32> to vector<48x256xbf16>
    %66 = vector.extract_strided_slice %65 {offsets = [0, 0], sizes = [48, 128], strides = [1, 1]} : vector<48x256xbf16> to vector<48x128xbf16>
    %c1024 = arith.constant 1024 : index
    %c0_36 = arith.constant 0 : index
    %67 = vector.load %arg0[%c1024, %c0_36] : memref<1792x256xbf16, #tpu.memory_space<vmem>>, vector<128x128xbf16>
    %cst_37 = arith.constant dense<0.000000e+00> : vector<48x128xf32>
    %68 = tpu.matmul %66, %67, %cst_37 {dimension_numbers = #tpu.dot_dimension_numbers<[1], [0], [0], [1], [0, 0, 1, 1], [], []>} : vector<48x128xbf16>, vector<128x128xbf16>, vector<48x128xf32> -> vector<48x128xf32>
    %c64_38 = arith.constant 64 : index
    %c0_39 = arith.constant 0 : index
    %69 = vector.load %arg1[%c64_38, %c0_39] : memref<112x256xf32, #tpu.memory_space<vmem>>, vector<1x128xf32>
    %70 = vector.broadcast %69 : vector<1x128xf32> to vector<48x128xf32>
    %71 = arith.addf %68, %70 : vector<48x128xf32>
    %72 = vector.extract_strided_slice %65 {offsets = [0, 128], sizes = [48, 128], strides = [1, 1]} : vector<48x256xbf16> to vector<48x128xbf16>
    %c1152 = arith.constant 1152 : index
    %c0_40 = arith.constant 0 : index
    %73 = vector.load %arg0[%c1152, %c0_40] : memref<1792x256xbf16, #tpu.memory_space<vmem>>, vector<128x128xbf16>
    %cst_41 = arith.constant dense<0.000000e+00> : vector<48x128xf32>
    %74 = tpu.matmul %72, %73, %cst_41 {dimension_numbers = #tpu.dot_dimension_numbers<[1], [0], [0], [1], [0, 0, 1, 1], [], []>} : vector<48x128xbf16>, vector<128x128xbf16>, vector<48x128xf32> -> vector<48x128xf32>
    %c72 = arith.constant 72 : index
    %c0_42 = arith.constant 0 : index
    %75 = vector.load %arg1[%c72, %c0_42] : memref<112x256xf32, #tpu.memory_space<vmem>>, vector<1x128xf32>
    %76 = vector.broadcast %75 : vector<1x128xf32> to vector<48x128xf32>
    %77 = arith.addf %74, %76 : vector<48x128xf32>
    %c80 = arith.constant 80 : index
    %c0_43 = arith.constant 0 : index
    %78 = vector.load %arg3[%c80, %c0_43] : memref<192x128xbf16, #tpu.memory_space<vmem>>, vector<48x48xbf16>
    %79 = arith.truncf %77 : vector<48x128xf32> to vector<48x128xbf16>
    %cst_44 = arith.constant dense<0.000000e+00> : vector<48x128xf32>
    %80 = tpu.matmul %78, %79, %cst_44 {dimension_numbers = #tpu.dot_dimension_numbers<[1], [0], [0], [1], [0, 0, 1, 1], [], []>} : vector<48x48xbf16>, vector<48x128xbf16>, vector<48x128xf32> -> vector<48x128xf32>
    %81 = arith.addf %71, %80 : vector<48x128xf32>
    %c0_45 = arith.constant 0 : index
    %c0_46 = arith.constant 0 : index
    %82 = vector.load %arg2[%c0_45, %c0_46] : memref<144x128xbf16, #tpu.memory_space<vmem>>, vector<64x128xbf16>
    %c1280 = arith.constant 1280 : index
    %c0_47 = arith.constant 0 : index
    %83 = vector.load %arg0[%c1280, %c0_47] : memref<1792x256xbf16, #tpu.memory_space<vmem>>, vector<128x128xbf16>
    %cst_48 = arith.constant dense<0.000000e+00> : vector<64x128xf32>
    %84 = tpu.matmul %82, %83, %cst_48 {dimension_numbers = #tpu.dot_dimension_numbers<[1], [0], [0], [1], [0, 0, 1, 1], [], []>} : vector<64x128xbf16>, vector<128x128xbf16>, vector<64x128xf32> -> vector<64x128xf32>
    %c80_49 = arith.constant 80 : index
    %c0_50 = arith.constant 0 : index
    %85 = vector.load %arg1[%c80_49, %c0_50] : memref<112x256xf32, #tpu.memory_space<vmem>>, vector<1x128xf32>
    %86 = vector.broadcast %85 : vector<1x128xf32> to vector<64x128xf32>
    %87 = arith.addf %84, %86 : vector<64x128xf32>
    %cst_51 = arith.constant 0.000000e+00 : f32
    %88 = vector.broadcast %cst_51 : f32 to vector<64x128xf32>
    %89 = arith.maximumf %87, %88 : vector<64x128xf32>
    %90 = arith.truncf %89 : vector<64x128xf32> to vector<64x128xbf16>
    %c1408 = arith.constant 1408 : index
    %c0_52 = arith.constant 0 : index
    %91 = vector.load %arg0[%c1408, %c0_52] : memref<1792x256xbf16, #tpu.memory_space<vmem>>, vector<128x128xbf16>
    %cst_53 = arith.constant dense<0.000000e+00> : vector<64x128xf32>
    %92 = tpu.matmul %90, %91, %cst_53 {dimension_numbers = #tpu.dot_dimension_numbers<[1], [0], [0], [1], [0, 0, 1, 1], [], []>} : vector<64x128xbf16>, vector<128x128xbf16>, vector<64x128xf32> -> vector<64x128xf32>
    %c88 = arith.constant 88 : index
    %c0_54 = arith.constant 0 : index
    %93 = vector.load %arg1[%c88, %c0_54] : memref<112x256xf32, #tpu.memory_space<vmem>>, vector<1x128xf32>
    %94 = vector.broadcast %93 : vector<1x128xf32> to vector<64x128xf32>
    %95 = arith.addf %92, %94 : vector<64x128xf32>
    %96 = arith.truncf %81 : vector<48x128xf32> to vector<48x128xbf16>
    %c1536 = arith.constant 1536 : index
    %c0_55 = arith.constant 0 : index
    %97 = vector.load %arg0[%c1536, %c0_55] : memref<1792x256xbf16, #tpu.memory_space<vmem>>, vector<128x128xbf16>
    %cst_56 = arith.constant dense<0.000000e+00> : vector<48x128xf32>
    %98 = tpu.matmul %96, %97, %cst_56 {dimension_numbers = #tpu.dot_dimension_numbers<[1], [0], [0], [1], [0, 0, 1, 1], [], []>} : vector<48x128xbf16>, vector<128x128xbf16>, vector<48x128xf32> -> vector<48x128xf32>
    %c96 = arith.constant 96 : index
    %c0_57 = arith.constant 0 : index
    %99 = vector.load %arg1[%c96, %c0_57] : memref<112x256xf32, #tpu.memory_space<vmem>>, vector<1x128xf32>
    %100 = vector.broadcast %99 : vector<1x128xf32> to vector<48x128xf32>
    %101 = arith.addf %98, %100 : vector<48x128xf32>
    %cst_58 = arith.constant 0.000000e+00 : f32
    %102 = vector.broadcast %cst_58 : f32 to vector<48x128xf32>
    %103 = arith.maximumf %101, %102 : vector<48x128xf32>
    %104 = arith.truncf %103 : vector<48x128xf32> to vector<48x128xbf16>
    %c1664 = arith.constant 1664 : index
    %c0_59 = arith.constant 0 : index
    %105 = vector.load %arg0[%c1664, %c0_59] : memref<1792x256xbf16, #tpu.memory_space<vmem>>, vector<128x128xbf16>
    %cst_60 = arith.constant dense<0.000000e+00> : vector<48x128xf32>
    %106 = tpu.matmul %104, %105, %cst_60 {dimension_numbers = #tpu.dot_dimension_numbers<[1], [0], [0], [1], [0, 0, 1, 1], [], []>} : vector<48x128xbf16>, vector<128x128xbf16>, vector<48x128xf32> -> vector<48x128xf32>
    %c104 = arith.constant 104 : index
    %c0_61 = arith.constant 0 : index
    %107 = vector.load %arg1[%c104, %c0_61] : memref<112x256xf32, #tpu.memory_space<vmem>>, vector<1x128xf32>
    %108 = vector.broadcast %107 : vector<1x128xf32> to vector<48x128xf32>
    %109 = arith.addf %106, %108 : vector<48x128xf32>
    %c128_62 = arith.constant 128 : index
    %c0_63 = arith.constant 0 : index
    %110 = vector.load %arg3[%c128_62, %c0_63] : memref<192x128xbf16, #tpu.memory_space<vmem>>, vector<64x48xbf16>
    %111 = arith.truncf %109 : vector<48x128xf32> to vector<48x128xbf16>
    %cst_64 = arith.constant dense<0.000000e+00> : vector<64x128xf32>
    %112 = tpu.matmul %110, %111, %cst_64 {dimension_numbers = #tpu.dot_dimension_numbers<[1], [0], [0], [1], [0, 0, 1, 1], [], []>} : vector<64x48xbf16>, vector<48x128xbf16>, vector<64x128xf32> -> vector<64x128xf32>
    %113 = arith.addf %95, %112 : vector<64x128xf32>
    %c0_65 = arith.constant 0 : index
    %c0_66 = arith.constant 0 : index
    %114 = vector.load %arg4[%c0_65, %c0_66] : memref<64x128xf32, #tpu.memory_space<vmem>>, vector<64x128xf32>
    tpu.vector_store %arg4[%c0_65, %c0_66], %113 {strides = array<i32>} : memref<64x128xf32, #tpu.memory_space<vmem>>, vector<64x128xf32>,
    return
  }
}

</mosaic_0001>

<bundles_post_ra>
// kernel: tpu_custom_call.1
= control target key start
LH: loop header
LB: loop body
LE: loop exit
PB: predicated region body
PF: predicated region fallthrough
CT: control target
= control target key end

     0   :  { %9 = vsyncpa [#allocation3], 0  ;;  %s3681_s0 = inlined_call_operand.hbm [shape: bf16[1792,256], index: 0, kind: input, shape index: {}]   ;;  %s3682_s1 = inlined_call_operand.hbm [shape: f32[112,256], index: 1, kind: input, shape index: {}]   ;;  %s3683_s2 = inlined_call_operand.hbm [shape: bf16[144,128], index: 2, kind: input, shape index: {}]   ;;  %s3684_s3 = inlined_call_operand.hbm [shape: bf16[192,128], index: 3, kind: input, shape index: {}]   ;;  %s3685_s4 = inlined_call_operand.hbm [shape: f32[64,128], index: 4, kind: output, shape index: {}]  }
   0x1   :  { %10 = vsyncpa [#allocation6], 0 }
   0x2   :  { %11 = vsyncpa [#allocation9], 0 }
   0x3   :  { %12 = vsyncpa [#allocation4], 0  ;;  %s3428_s15 = smov [#allocation5]   ;;  %s3310_s19 = scalar_lea.hbm %s3682_s1, 3584 }
   0x4   :  { %s30_s16 = sshll.u32 %s3428_s15, 4  ;;  %p3311_p0 = scmp.ne.s32.totalorder %s3682_s1, %s3310_s19  ;;  %s31_s16 = int_to_ptr.vmem [resolvable:$true] %s30_s16 }
   0x5   :  { %p3314_p1 = scmp.lt.u32.totalorder %s3310_s19, %s3682_s1 }
   0x7   :  { %p3316_p2 = pnand %p3314_p1, %p3311_p0 }
   0x9   :  { %3319 = shalt.err (!%p3316_p2)
}
   0xa   :  { %s3320_s24 = scalar_lea.vmem %s31_s16, 3584  ;;  %p3325_p4 = scmp.lt.s32.totalorder %s31_s16, %s31_s16 }
   0xb   :  { %p3321_p3 = scmp.ne.s32.totalorder %s31_s16, %s3320_s24  ;;  %p3326_p5 = scmp.lt.s32.totalorder %s3320_s24, %s3320_s24 }
   0xd   :  { %p3327_p6 = por %p3326_p5, %p3325_p4 }
   0xf   :  { %p3328_p7 = pnand %p3327_p6, %p3321_p3 }
  0x11   :  { %3331 = shalt.err (!%p3328_p7)
}
  0x12   :  { %s3429_s25 = smov 256   ;;  %s3430_s26 = smov 16  }
  0x13   :  { %36 = dma.hbm_to_vmem [thread:$0]  %s3682_s1, 3584, %s31_s16, [#allocation6], %s3429_s25, %s3429_s25, %s3430_s26  }
  0x14   :  { %s3431_s29 = smov [#allocation2]   ;;  %s3332_s7 = scalar_lea.hbm %s3681_s0, 28672 }
  0x15   :  { %s18_s30 = sshll.u32 %s3431_s29, 4  ;;  %p3333_p8 = scmp.ne.s32.totalorder %s3681_s0, %s3332_s7  ;;  %s19_s30 = int_to_ptr.vmem [resolvable:$true] %s18_s30 }
  0x16   :  { %p3336_p9 = scmp.lt.u32.totalorder %s3332_s7, %s3681_s0 }
  0x18   :  { %p3338_p10 = pnand %p3336_p9, %p3333_p8 }
  0x1a   :  { %3341 = shalt.err (!%p3338_p10)
}
  0x1b   :  { %s3342_s12 = scalar_lea.vmem %s19_s30, 28672  ;;  %p3347_p12 = scmp.lt.s32.totalorder %s19_s30, %s19_s30 }
  0x1c   :  { %p3343_p11 = scmp.ne.s32.totalorder %s19_s30, %s3342_s12  ;;  %p3348_p13 = scmp.lt.s32.totalorder %s3342_s12, %s3342_s12 }
  0x1e   :  { %p3349_p0 = por %p3348_p13, %p3347_p12 }
  0x20   :  { %p3350_p1 = pnand %p3349_p0, %p3343_p11 }
  0x22   :  { %3353 = shalt.err (!%p3350_p1)
}
  0x23   :  { %s3432_s1 = smov 128   ;;  %s3433_s13 = smov 8  }
  0x24   :  { %24 = dma.hbm_to_vmem [thread:$0]  %s3681_s0, 28672, %s19_s30, [#allocation3], %s3432_s1, %s3432_s1, %s3433_s13  }
  0x25   :  { %s3434_s16 = smov [#allocation7]   ;;  %s3354_s20 = scalar_lea.hbm %s3683_s2, 1152 }
  0x26   :  { %s42_s17 = sshll.u32 %s3434_s16, 4  ;;  %p3355_p2 = scmp.ne.s32.totalorder %s3683_s2, %s3354_s20  ;;  %s43_s17 = int_to_ptr.vmem [resolvable:$true] %s42_s17 }
  0x27   :  { %p3358_p3 = scmp.lt.u32.totalorder %s3354_s20, %s3683_s2 }
  0x29   :  { %p3360_p4 = pnand %p3358_p3, %p3355_p2 }
  0x2b   :  { %3363 = shalt.err (!%p3360_p4)
}
  0x2c   :  { %s3364_s25 = scalar_lea.vmem %s43_s17, 1152  ;;  %p3369_p6 = scmp.lt.s32.totalorder %s43_s17, %s43_s17 }
  0x2d   :  { %p3365_p5 = scmp.ne.s32.totalorder %s43_s17, %s3364_s25  ;;  %p3370_p7 = scmp.lt.s32.totalorder %s3364_s25, %s3364_s25 }
  0x2f   :  { %p3371_p8 = por %p3370_p7, %p3369_p6 }
  0x31   :  { %p3372_p9 = pnand %p3371_p8, %p3365_p5 }
  0x33   :  { %3375 = shalt.err (!%p3372_p9)
}
  0x34   :  { %s3435_s0 = smov 64   ;;  %s3436_s26 = smov 4  }
  0x35   :  { %48 = dma.hbm_to_vmem [thread:$0]  %s3683_s2, 1152, %s43_s17, [#allocation6], %s3435_s0, %s3435_s0, %s3436_s26  }
  0x36   :  { %s3437_s29 = smov [#allocation8]   ;;  %s3376_s7 = scalar_lea.hbm %s3684_s3, 1536 }
  0x37   :  { %s54_s30 = sshll.u32 %s3437_s29, 4  ;;  %p3377_p10 = scmp.ne.s32.totalorder %s3684_s3, %s3376_s7  ;;  %s55_s30 = int_to_ptr.vmem [resolvable:$true] %s54_s30 }
  0x38   :  { %p3380_p11 = scmp.lt.u32.totalorder %s3376_s7, %s3684_s3 }
  0x3a   :  { %p3382_p12 = pnand %p3380_p11, %p3377_p10 }
  0x3c   :  { %3385 = shalt.err (!%p3382_p12)
}
  0x3d   :  { %s3386_s12 = scalar_lea.vmem %s55_s30, 1536  ;;  %p3391_p0 = scmp.lt.s32.totalorder %s55_s30, %s55_s30 }
  0x3e   :  { %p3387_p13 = scmp.ne.s32.totalorder %s55_s30, %s3386_s12  ;;  %p3392_p1 = scmp.lt.s32.totalorder %s3386_s12, %s3386_s12 }
  0x40   :  { %p3393_p2 = por %p3392_p1, %p3391_p0 }
  0x42   :  { %p3394_p3 = pnand %p3393_p2, %p3387_p13 }
  0x44   :  { %3397 = shalt.err (!%p3394_p3)
}
  0x45   :  { %60 = dma.hbm_to_vmem [thread:$0]  %s3684_s3, 1536, %s55_s30, [#allocation9], %s3435_s0, %s3435_s0, %s3436_s26  }
  0x46   :  { %3420 = dma.done.wait [#allocation3], 28672  }
  0x47   :  { %3421 = vsyncadd [#allocation3], 4294938624 }
  0x48   :  { %3422 = dma.done.wait [#allocation6], 4736  }
  0x49   :  { %3423 = vsyncadd [#allocation6], 4294962560 }
  0x4a   :  { %3424 = dma.done.wait [#allocation9], 1536  }
  0x4b   :  { %3425 = vsyncadd [#allocation9], 4294965760  ;;  %v3438_v0 = vmov 0   ;;  %v3145_v1 = vld [vmem:[#allocation2 + $0x4] ss:$8 sps:$4 sm:$0xff]   ;;  %v3169_v22 = vld [vmem:[#allocation7 + $0x38] sm:$0xff]   ;;  %v96_v35 = vlaneseq }
  0x4c   :  { %230 = vmatprep.mubr.bf16.mxu0 %v3438_v0  ;;  %v3147_v2 = vld [vmem:[#allocation2] ss:$8 sps:$4 sm:$0xff]   ;;  %198 = vmatprep.subr.bf16.mxu0 %v3145_v1  ;;  %v3148_v3 = vld [vmem:[#allocation2 + $0x14] ss:$8 sps:$4 sm:$0xff]   ;;  %v3150_v4 = vld [vmem:[#allocation2 + $0x10] ss:$8 sps:$4 sm:$0xff]  }
  0x4d   :  { %199 = vmatpush1.bf16.msra.mxu0 %v3147_v2  ;;  %v3151_v5 = vld [vmem:[#allocation2 + $0x24] ss:$8 sps:$4 sm:$0xff]   ;;  %v3153_v6 = vld [vmem:[#allocation2 + $0x20] ss:$8 sps:$4 sm:$0xff]   ;;  %v3154_v7 = vld [vmem:[#allocation2 + $0x34] ss:$8 sps:$4 sm:$0xff]  }
  0x4e   :  { %200 = vmatprep.subr.bf16.mxu0 %v3148_v3  ;;  %v3156_v8 = vld [vmem:[#allocation2 + $0x30] ss:$8 sps:$4 sm:$0xff]   ;;  %v3157_v9 = vld [vmem:[#allocation2 + $0x44] ss:$8 sps:$4 sm:$0xff]   ;;  %v3171_v10 = vld [vmem:[#allocation2 + $0x80] ss:$8 sps:$4 sm:$0xff]  }
  0x4f   :  { %v3159_v11 = vld [vmem:[#allocation2 + $0x40] ss:$8 sps:$4 sm:$0xff]   ;;  %2725 = vmatprep.subr.bf16.mxu1 %v3171_v10  ;;  %v3173_v12 = vld [vmem:[#allocation2 + $0x90] ss:$8 sps:$4 sm:$0xff]   ;;  %v3160_v13 = vld [vmem:[#allocation2 + $0x54] ss:$8 sps:$4 sm:$0xff]  }
  0x50   :  { %2726 = vmatpush3.bf16.msra.mxu1 %v3171_v10  ;;  %v3175_v14 = vld [vmem:[#allocation2 + $0xa0] ss:$8 sps:$4 sm:$0xff]   ;;  %v3162_v15 = vld [vmem:[#allocation2 + $0x50] ss:$8 sps:$4 sm:$0xff]   ;;  %v3163_v16 = vld [vmem:[#allocation2 + $0x64] ss:$8 sps:$4 sm:$0xff]  }
  0x51   :  { %201 = vmatpush1.bf16.msra.mxu0 %v3150_v4  ;;  %2727 = vmatprep.subr.bf16.mxu1 %v3173_v12  ;;  %v3165_v17 = vld [vmem:[#allocation2 + $0x60] ss:$8 sps:$4 sm:$0xff]   ;;  %v3177_v18 = vld [vmem:[#allocation2 + $0xb0] ss:$8 sps:$4 sm:$0xff]   ;;  %v3166_v19 = vld [vmem:[#allocation2 + $0x74] ss:$8 sps:$4 sm:$0xff]  }
  0x52   :  { %202 = vmatprep.subr.bf16.mxu0 %v3151_v5  ;;  %v3168_v20 = vld [vmem:[#allocation2 + $0x70] ss:$8 sps:$4 sm:$0xff]   ;;  %v3172_v21 = vld [vmem:[#allocation2 + $0x100] ss:$8 sps:$4 sm:$0xff]   ;;  %v3520_v36 = vshrl.u32 %v96_v35, 7  ;;  %vm507_vm0 = vcmask 261120  }
  0x53   :  { %v3174_v23 = vld [vmem:[#allocation2 + $0x110] ss:$8 sps:$4 sm:$0xff]   ;;  %v3176_v24 = vld [vmem:[#allocation2 + $0x120] ss:$8 sps:$4 sm:$0xff]   ;;  %vm3440_vm1 = vmmov 0   ;;  %vm1636_vm2 = vcmask 392192  }
  0x54   :  { %2728 = vmatpush3.bf16.msra.mxu1 %v3173_v12  ;;  %v3170_v25 = vld [vmem:[#allocation7 + $0x40] sm:$0xff]   ;;  %v3178_v26 = vld [vmem:[#allocation2 + $0x130] ss:$8 sps:$4 sm:$0xff]   ;;  %v98_v37 = vsub.s32 0, %v3520_v36  ;;  %v102_v39 = vsub.s32 1, %v3520_v36  ;;  %s3441_s3 = smov [#allocation10]  }
  0x55   :  { %203 = vmatpush1.bf16.msra.mxu0 %v3153_v6  ;;  %2729 = vmatprep.subr.bf16.mxu1 %v3175_v14  ;;  %v3179_v27 = vld [vmem:[#allocation2 + $0xc0] ss:$8 sps:$4 sm:$0xff]   ;;  %v3181_v29 = vld [vmem:[#allocation2 + $0xd0] ss:$8 sps:$4 sm:$0xff]   ;;  %s2398_s15 = sshll.u32 %s3441_s3, 4  ;;  %s2399_s15 = int_to_ptr.vmem [resolvable:$true] %s2398_s15 }
  0x56   :  { %204 = vmatprep.subr.bf16.mxu0 %v3154_v7  ;;  %v3180_v28 = vld [vmem:[#allocation2 + $0x140] ss:$8 sps:$4 sm:$0xff]   ;;  %v3182_v30 = vld [vmem:[#allocation2 + $0x150] ss:$8 sps:$4 sm:$0xff]   ;;  %s3398_s16 = scalar_lea.vmem %s2399_s15, 1024  ;;  %p3403_p5 = scmp.lt.s32.totalorder %s2399_s15, %s2399_s15 }
  0x57   :  { %v3183_v31 = vld [vmem:[#allocation2 + $0xe0] ss:$8 sps:$4 sm:$0xff]   ;;  %v3185_v33 = vld [vmem:[#allocation2 + $0xf0] ss:$8 sps:$4 sm:$0xff]   ;;  %p3399_p4 = scmp.ne.s32.totalorder %s2399_s15, %s3398_s16  ;;  %p3404_p6 = scmp.lt.s32.totalorder %s3398_s16, %s3398_s16 }
  0x58   :  { %2730 = vmatpush3.bf16.msra.mxu1 %v3175_v14  ;;  %v3184_v32 = vld [vmem:[#allocation2 + $0x160] ss:$8 sps:$4 sm:$0xff]   ;;  %v3186_v34 = vld [vmem:[#allocation2 + $0x170] ss:$8 sps:$4 sm:$0xff]  }
  0x59   :  { %205 = vmatpush1.bf16.msra.mxu0 %v3156_v8  ;;  %2731 = vmatprep.subr.bf16.mxu1 %v3177_v18  ;;  %v94_v38 = vld [vmem:[#allocation5] ss:$8 sm:$0x3]  ;;  %v3439_v8 = vmov 0.0   ;;  %p3405_p7 = por %p3404_p6, %p3403_p5 }
  0x5a   :  { %206 = vmatprep.subr.bf16.mxu0 %v3157_v9  ;;  %v99_v40 = vrot.slane %v94_v38, %v98_v37  ;;  %v103_v41 = vrot.slane %v94_v38, %v102_v39  ;;  %v3187_v7 = vld [vmem:[#allocation8] sm:$0xff]   ;;  %v393_v10 = vld [vmem:[#allocation5 + $0x20] ss:$0 sm:$0xff]  ;;  %v3205_v38 = vld [vmem:[#allocation7 + $0x30] sm:$0xff]  }
  0x5b   :  { %v3203_v35 = vld [vmem:[#allocation2 + $0x2c0] ss:$8 sps:$4 sm:$0xff]   ;;  %p3406_p8 = pnand %p3405_p7, %p3399_p4 }
  0x5c   :  { %2732 = vmatpush3.bf16.msra.mxu1 %v3177_v18 }
  0x5d   :  { %207 = vmatpush1.bf16.msra.mxu0 %v3159_v11  ;;  %2733 = vmatprep.subr.bf16.mxu1 %v3179_v27 }
  0x5e   :  { %208 = vmatprep.subr.bf16.mxu0 %v3160_v13 }
  0x60   :  { %2734 = vmatpush3.bf16.msra.mxu1 %v3179_v27  ;;  %v3195_v27 = vld [vmem:[#allocation2 + $0x1e0] ss:$8 sps:$4 sm:$0xff]  }
  0x61   :  { %209 = vmatpush1.bf16.msra.mxu0 %v3162_v15  ;;  %2735 = vmatprep.subr.bf16.mxu1 %v3181_v29 }
  0x62   :  { %210 = vmatprep.subr.bf16.mxu0 %v3163_v16 }
  0x64   :  { %2736 = vmatpush3.bf16.msra.mxu1 %v3181_v29  ;;  %v3198_v29 = vld [vmem:[#allocation2 + $0x280] ss:$8 sps:$4 sm:$0xff]  }
  0x65   :  { %211 = vmatpush1.bf16.msra.mxu0 %v3165_v17  ;;  %2737 = vmatprep.subr.bf16.mxu1 %v3183_v31 }
  0x66   :  { %212 = vmatprep.subr.bf16.mxu0 %v3166_v19 }
  0x68   :  { %2738 = vmatpush3.bf16.msra.mxu1 %v3183_v31  ;;  %v3199_v31 = vld [vmem:[#allocation2 + $0x290] ss:$8 sps:$4 sm:$0xff]  }
  0x69   :  { %213 = vmatpush1.bf16.msra.mxu0 %v3168_v20  ;;  %2739 = vmatprep.subr.bf16.mxu1 %v3185_v33  ;;  %v3188_v20 = vld [vmem:[#allocation8 + $0x8] sm:$0xff]  }
  0x6a   :  { %2745 = vmatprep.subr.bf16.mxu0 %v3172_v21 }
  0x6c   :  { %231 = vmatmul.mubr.bf16.vlgmr.msra.gmra.mrb[0].mxu0 %v3169_v22  ;;  %2740 = vmatpush3.bf16.msra.mxu1 %v3185_v33  ;;  %v3190_v22 = vld [vmem:[#allocation2 + $0x190] ss:$8 sps:$4 sm:$0xff]   ;;  %v3202_v33 = vld [vmem:[#allocation7 + $0x28] sm:$0xff]  }
  0x6d   :  { %240 = vmatprep.mubr.bf16.mxu0 %v3438_v0  ;;  %2746 = vmatpush3.bf16.msra.mxu0 %v3172_v21  ;;  %v3189_v21 = vld [vmem:[#allocation2 + $0x180] ss:$8 sps:$4 sm:$0xff]  }
  0x6e   :  { %2747 = vmatprep.subr.bf16.mxu0 %v3174_v23 }
  0x71   :  { %2748 = vmatpush3.bf16.msra.mxu0 %v3174_v23  ;;  %v3191_v23 = vld [vmem:[#allocation2 + $0x1a0] ss:$8 sps:$4 sm:$0xff]  }
  0x72   :  { %2749 = vmatprep.subr.bf16.mxu0 %v3176_v24 }
  0x74   :  { %241 = vmatmul.mubr.bf16.gmra.mrb[4].mxu0 %v3170_v25  ;;  %v3193_v25 = vld [vmem:[#allocation2 + $0x1c0] ss:$8 sps:$4 sm:$0xff]  }
  0x75   :  { %2750 = vmatpush3.bf16.msra.mxu0 %v3176_v24  ;;  %v3192_v24 = vld [vmem:[#allocation2 + $0x1b0] ss:$8 sps:$4 sm:$0xff]  }
  0x76   :  { %2751 = vmatprep.subr.bf16.mxu0 %v3178_v26 }
  0x79   :  { %2752 = vmatpush3.bf16.msra.mxu0 %v3178_v26  ;;  %v3194_v26 = vld [vmem:[#allocation2 + $0x1d0] ss:$8 sps:$4 sm:$0xff]  }
  0x7a   :  { %2753 = vmatprep.subr.bf16.mxu0 %v3180_v28 }
  0x7d   :  { %2754 = vmatpush3.bf16.msra.mxu0 %v3180_v28  ;;  %v3196_v28 = vld [vmem:[#allocation2 + $0x1f0] ss:$8 sps:$4 sm:$0xff]  }
  0x7e   :  { %2755 = vmatprep.subr.bf16.mxu0 %v3182_v30 }
  0x81   :  { %2756 = vmatpush3.bf16.msra.mxu0 %v3182_v30  ;;  %v3197_v30 = vld [vmem:[#allocation7 + $0x20] sm:$0xff]  }
  0x82   :  { %2757 = vmatprep.subr.bf16.mxu0 %v3184_v32 }
  0x85   :  { %2758 = vmatpush3.bf16.msra.mxu0 %v3184_v32  ;;  %v3200_v32 = vld [vmem:[#allocation2 + $0x2a0] ss:$8 sps:$4 sm:$0xff]  }
  0x86   :  { %2759 = vmatprep.subr.bf16.mxu0 %v3186_v34 }
  0x89   :  { %2760 = vmatpush3.bf16.msra.mxu0 %v3186_v34  ;;  %v3201_v34 = vld [vmem:[#allocation2 + $0x2b0] ss:$8 sps:$4 sm:$0xff]  }
  0x8a   :  { %2801 = vmatprep.subr.bf16.mxu0 %v3439_v8 }
 0x13f   :  { %v232_v42 = vpop.f32.mrb[0].mxu0 }
 0x140   :  { %v233_v43 = vadd.f32 %v232_v42, %v99_v40  ;;  %v234_v44 = vpop.f32.mrb[1].mxu0  ;;  %v3207_v42 = vld [vmem:[#allocation2 + $0x2f0] ss:$8 sps:$4 sm:$0xff]  }
 0x141   :  { %v235_v45 = vadd.f32 %v234_v44, %v103_v41  ;;  %v236_v46 = vpop.f32.mrb[2].mxu0  ;;  %v3209_v44 = vld [vmem:[#allocation2 + $0x210] ss:$8 sps:$4 sm:$0xff]  }
 0x142   :  { %v237_v47 = vadd.f32 %v236_v46, %v99_v40  ;;  %v238_v48 = vpop.f32.mrb[3].mxu0  ;;  %v251_v50 = vmax.f32 %v233_v43, 0.0  ;;  %v3208_v43 = vld [vmem:[#allocation2 + $0x200] ss:$8 sps:$4 sm:$0xff]   ;;  %v3211_v46 = vld [vmem:[#allocation2 + $0x230] ss:$8 sps:$4 sm:$0xff]  }
 0x143   :  { %v239_v49 = vadd.f32 %v238_v48, %v103_v41  ;;  %v252_v52 = vmax.f32 %v235_v45, 0.0  ;;  %v3210_v45 = vld [vmem:[#allocation2 + $0x220] ss:$8 sps:$4 sm:$0xff]   ;;  %v3213_v48 = vld [vmem:[#allocation2 + $0x250] ss:$8 sps:$4 sm:$0xff]  }
 0x144   :  { %v253_v51 = vmax.f32 %v237_v47, 0.0  ;;  %v3212_v47 = vld [vmem:[#allocation2 + $0x240] ss:$8 sps:$4 sm:$0xff]  }
 0x145   :  { %v254_v53 = vmax.f32 %v239_v49, 0.0  ;;  %v3214_v49 = vld [vmem:[#allocation2 + $0x260] ss:$8 sps:$4 sm:$0xff]  }
 0x146   :  { %v259_v54 = vpack.c.bf16 %v253_v51, %v251_v50  ;;  %v3215_v50 = vld [vmem:[#allocation2 + $0x270] ss:$8 sps:$4 sm:$0xff]   ;;  %v3216_v51 = vld [vmem:[#allocation2 + $0x300] ss:$8 sps:$4 sm:$0xff]  }
 0x147   :  { %v260_v55 = vpack.c.bf16 %v254_v53, %v252_v52  ;;  %v242_v56 = vpop.f32.mrb[4].mxu0  ;;  %v279_v52 = vld [vmem:[#allocation5 + $0x10] ss:$0 sm:$0xff] }
 0x148   :  { %v243_v57 = vadd.f32 %v242_v56, %v99_v40  ;;  %v244_v58 = vpop.f32.mrb[5].mxu0  ;;  %2741 = vmatprep.mubr.bf16.mxu1 %v259_v54 }
 0x149   :  { %v245_v59 = vadd.f32 %v244_v58, %v103_v41  ;;  %v246_v60 = vpop.f32.mrb[6].mxu0  ;;  %2761 = vmatprep.mubr.bf16.mxu0 %v260_v55 }
 0x14a   :  { %v247_v61 = vadd.f32 %v246_v60, %v99_v40  ;;  %v248_v62 = vpop.f32.mrb[7].mxu0  ;;  %v255_v1 = vmax.f32 %v243_v57, 0.0  ;;  %v3204_v40 = vld [vmem:[#allocation2 + $0x2d0] ss:$8 sps:$4 sm:$0xff]  }
 0x14b   :  { %v249_v63 = vadd.f32 %v248_v62, %v103_v41  ;;  %v256_v3 = vmax.f32 %v245_v59, 0.0  ;;  %v3206_v41 = vld [vmem:[#allocation2 + $0x2e0] ss:$8 sps:$4 sm:$0xff]  }
 0x14c   :  { %v257_v2 = vmax.f32 %v247_v61, 0.0 }
 0x14d   :  { %v258_v4 = vmax.f32 %v249_v63, 0.0  ;;  %v589_v63 = vld [vmem:[#allocation5 + $0x30] ss:$0 sm:$0xff] }
 0x14e   :  { %v261_v5 = vpack.c.bf16 %v257_v2, %v255_v1 }
 0x14f   :  { %v262_v6 = vpack.c.bf16 %v258_v4, %v256_v3 }
 0x150   :  { %2742 = vmatmul.mubr.bf16.vlgmr.msra.gmra.mrb[0].mxu1 %v261_v5 }
 0x151   :  { %2762 = vmatmul.mubr.bf16.vlgmr.msra.gmra.mrb[8].mxu0 %v262_v6  ;;  %2769 = vmatprep.mubr.msk.bf16.mxu1 %vm507_vm0, %v3187_v7 }
 0x152   :  { %2817 = vmatprep.mubr.msk.bf16.mxu0 %vm3440_vm1, %v3439_v8  ;;  %2802 = vmatpush3.bf16.msra.mxu0 %v3208_v43 }
 0x153   :  { %2803 = vmatprep.subr.bf16.mxu0 %v3439_v8 }
 0x156   :  { %2804 = vmatpush3.bf16.msra.mxu0 %v3209_v44 }
 0x157   :  { %2805 = vmatprep.subr.bf16.mxu0 %v3439_v8 }
 0x15a   :  { %2806 = vmatpush3.bf16.msra.mxu0 %v3210_v45 }
 0x15b   :  { %2807 = vmatprep.subr.bf16.mxu0 %v3439_v8 }
 0x15e   :  { %2808 = vmatpush3.bf16.msra.mxu0 %v3211_v46 }
 0x15f   :  { %2809 = vmatprep.subr.bf16.mxu0 %v3439_v8 }
 0x162   :  { %2810 = vmatpush3.bf16.msra.mxu0 %v3212_v47 }
 0x163   :  { %2811 = vmatprep.subr.bf16.mxu0 %v3439_v8 }
 0x166   :  { %2812 = vmatpush3.bf16.msra.mxu0 %v3213_v48 }
 0x167   :  { %2813 = vmatprep.subr.bf16.mxu0 %v3439_v8 }
 0x16a   :  { %2814 = vmatpush3.bf16.msra.mxu0 %v3214_v49 }
 0x16b   :  { %2815 = vmatprep.subr.bf16.mxu0 %v3439_v8 }
 0x16e   :  { %2816 = vmatpush3.bf16.msra.mxu0 %v3215_v50 }
 0x16f   :  { %2849 = vmatprep.subr.bf16.mxu0 %v3216_v51 }
 0x224   :  { %v2763_v9 = vpop.f32.mrb[8].mxu0 }
 0x225   :  { %v476_v11 = vpop.f32.mrb[9].mxu0  ;;  %v485_v13 = vadd.f32 %v2763_v9, %v393_v10 }
 0x226   :  { %v2764_v12 = vpop.f32.mrb[10].mxu0  ;;  %v477_v16 = vadd.f32 %v476_v11, %v393_v10  ;;  %v3217_v11 = vld [vmem:[#allocation2 + $0x310] ss:$8 sps:$4 sm:$0xff]  }
 0x227   :  { %v488_v14 = vadd.f32 %v2764_v12, %v393_v10  ;;  %v479_v15 = vpop.f32.mrb[11].mxu0 }
 0x228   :  { %v480_v17 = vadd.f32 %v479_v15, %v393_v10 }
 0x229   :  { %v496_v18 = vpack.c.bf16 %v488_v14, %v485_v13 }
 0x22a   :  { %v495_v19 = vpack.c.bf16 %v480_v17, %v477_v16 }
 0x22c   :  { %2765 = vmatprep.subr.bf16.mxu1 %v495_v19 }
 0x22d   :  { %2766 = vmatpush3.bf16.msra.mxu1 %v495_v19  ;;  %v3218_v19 = vld [vmem:[#allocation2 + $0x320] ss:$8 sps:$4 sm:$0xff]  }
 0x22e   :  { %2767 = vmatprep.subr.bf16.mxu1 %v496_v18 }
 0x231   :  { %2768 = vmatpush3.bf16.msra.mxu1 %v496_v18 }
 0x232   :  { %2773 = vmatprep.subr.bf16.mxu1 %v3439_v8 }
 0x234   :  { %2770 = vmatmul.mubr.msk.bf16.vlgmr.msra.gmra.mrb[0].mxu1 %vm507_vm0, %v3188_v20 }
 0x235   :  { %2774 = vmatpush3.bf16.msra.mxu1 %v3189_v21  ;;  %2789 = vmatprep.mubr.msk.bf16.mxu1 %vm3440_vm1, %v3439_v8 }
 0x236   :  { %2775 = vmatprep.subr.bf16.mxu1 %v3439_v8 }
 0x239   :  { %2776 = vmatpush3.bf16.msra.mxu1 %v3190_v22  ;;  %v3219_v22 = vld [vmem:[#allocation2 + $0x330] ss:$8 sps:$4 sm:$0xff]  }
 0x23a   :  { %2777 = vmatprep.subr.bf16.mxu1 %v3439_v8 }
 0x23d   :  { %2778 = vmatpush3.bf16.msra.mxu1 %v3191_v23 }
 0x23e   :  { %2779 = vmatprep.subr.bf16.mxu1 %v3439_v8 }
 0x241   :  { %2780 = vmatpush3.bf16.msra.mxu1 %v3192_v24 }
 0x242   :  { %2781 = vmatprep.subr.bf16.mxu1 %v3439_v8 }
 0x245   :  { %2782 = vmatpush3.bf16.msra.mxu1 %v3193_v25 }
 0x246   :  { %2783 = vmatprep.subr.bf16.mxu1 %v3439_v8 }
 0x249   :  { %2784 = vmatpush3.bf16.msra.mxu1 %v3194_v26 }
 0x24a   :  { %2785 = vmatprep.subr.bf16.mxu1 %v3439_v8 }
 0x24d   :  { %2786 = vmatpush3.bf16.msra.mxu1 %v3195_v27 }
 0x24e   :  { %2787 = vmatprep.subr.bf16.mxu1 %v3439_v8 }
 0x251   :  { %2788 = vmatpush3.bf16.msra.mxu1 %v3196_v28 }
 0x252   :  { %2829 = vmatprep.subr.bf16.mxu1 %v3198_v29 }
 0x254   :  { %2790 = vmatmul.mubr.bf16.vlgmr.msra.gmra.mrb[4].mxu1 %v3197_v30  ;;  %v3220_v30 = vld [vmem:[#allocation2 + $0x340] ss:$8 sps:$4 sm:$0xff]  }
 0x255   :  { %2830 = vmatpush3.bf16.msra.mxu1 %v3198_v29  ;;  %2793 = vmatprep.mubr.msk.bf16.mxu1 %vm3440_vm1, %v3439_v8 }
 0x256   :  { %2831 = vmatprep.subr.bf16.mxu1 %v3199_v31 }
 0x259   :  { %2832 = vmatpush3.bf16.msra.mxu1 %v3199_v31 }
 0x25a   :  { %2833 = vmatprep.subr.bf16.mxu1 %v3200_v32 }
 0x25c   :  { %2794 = vmatmul.mubr.bf16.gmra.mrb[8].mxu1 %v3202_v33  ;;  %v3221_v33 = vld [vmem:[#allocation2 + $0x350] ss:$8 sps:$4 sm:$0xff]  }
 0x25d   :  { %2834 = vmatpush3.bf16.msra.mxu1 %v3200_v32  ;;  %2797 = vmatprep.mubr.msk.bf16.mxu1 %vm3440_vm1, %v3439_v8 }
 0x25e   :  { %2835 = vmatprep.subr.bf16.mxu1 %v3201_v34 }
 0x261   :  { %2836 = vmatpush3.bf16.msra.mxu1 %v3201_v34  ;;  %v3222_v34 = vld [vmem:[#allocation2 + $0x360] ss:$8 sps:$4 sm:$0xff]  }
 0x262   :  { %2837 = vmatprep.subr.bf16.mxu1 %v3203_v35 }
 0x264   :  { %2798 = vmatmul.mubr.bf16.gmra.mrb[12].mxu1 %v3205_v38  ;;  %v862_v38 = vld [vmem:[#allocation5 + $0x50] ss:$0 sm:$0xff] }
 0x265   :  { %2838 = vmatpush3.bf16.msra.mxu1 %v3203_v35  ;;  %v3223_v35 = vld [vmem:[#allocation2 + $0x370] ss:$8 sps:$4 sm:$0xff]  }
 0x266   :  { %2839 = vmatprep.subr.bf16.mxu1 %v3204_v40 }
 0x269   :  { %2840 = vmatpush3.bf16.msra.mxu1 %v3204_v40 }
 0x26a   :  { %2841 = vmatprep.subr.bf16.mxu1 %v3206_v41 }
 0x26d   :  { %2842 = vmatpush3.bf16.msra.mxu1 %v3206_v41 }
 0x26e   :  { %2843 = vmatprep.subr.bf16.mxu1 %v3207_v42 }
 0x271   :  { %2844 = vmatpush3.bf16.msra.mxu1 %v3207_v42 }
 0x307   :  { %v2771_v53 = vpop.f32.mrb[0].mxu1 }
 0x308   :  { %v548_v54 = vpop.f32.mrb[1].mxu1  ;;  %v3077_v56 = vadd.f32 %v2771_v53, %v279_v52 }
 0x309   :  { %v2772_v55 = vpop.f32.mrb[2].mxu1  ;;  %v3078_v59 = vadd.f32 %v548_v54, %v279_v52  ;;  %v3227_v54 = vld [vmem:[#allocation2 + $0x380] ss:$8 sps:$4 sm:$0xff]  }
 0x30a   :  { %v3079_v57 = vadd.f32 %v2772_v55, %v279_v52  ;;  %v551_v58 = vpop.f32.mrb[3].mxu1  ;;  %v3229_v55 = vld [vmem:[#allocation2 + $0x384] ss:$8 sps:$4 sm:$0xff]  }
 0x30b   :  { %v3080_v60 = vadd.f32 %v551_v58, %v279_v52  ;;  %1287 = vmatprep.subr.bf16.mxu1 %v3229_v55  ;;  %v3235_v58 = vld [vmem:[#allocation2 + $0x3a4] ss:$8 sps:$4 sm:$0xff]  }
 0x30c   :  { %v845_v61 = vpack.c.bf16 %v3079_v57, %v3077_v56  ;;  %v3232_v56 = vld [vmem:[#allocation2 + $0x394] ss:$8 sps:$4 sm:$0xff]   ;;  %v3230_v57 = vld [vmem:[#allocation2 + $0x390] ss:$8 sps:$4 sm:$0xff]  }
 0x30d   :  { %v844_v62 = vpack.c.bf16 %v3080_v60, %v3078_v59  ;;  %v3233_v59 = vld [vmem:[#allocation2 + $0x3a0] ss:$8 sps:$4 sm:$0xff]   ;;  %v3238_v60 = vld [vmem:[#allocation2 + $0x3b4] ss:$8 sps:$4 sm:$0xff]  }
 0x30f   :  { %2845 = vmatprep.mubr.bf16.mxu1 %v844_v62  ;;  %v3241_v62 = vld [vmem:[#allocation2 + $0x3c4] ss:$8 sps:$4 sm:$0xff]  }
 0x310   :  { %2846 = vmatmul.mubr.bf16.vlgmr.msra.gmra.mrb[16].mxu1 %v845_v61  ;;  %v3236_v61 = vld [vmem:[#allocation2 + $0x3b0] ss:$8 sps:$4 sm:$0xff]  }
 0x311   :  { %1319 = vmatprep.mubr.bf16.mxu1 %v3438_v0  ;;  %1288 = vmatpush1.bf16.msra.mxu1 %v3227_v54 }
 0x312   :  { %1289 = vmatprep.subr.bf16.mxu1 %v3232_v56  ;;  %v3260_v56 = vld [vmem:[#allocation2 + $0x4c0] ss:$8 sps:$4 sm:$0xff]  }
 0x315   :  { %1290 = vmatpush1.bf16.msra.mxu1 %v3230_v57 }
 0x316   :  { %1291 = vmatprep.subr.bf16.mxu1 %v3235_v58  ;;  %v3262_v58 = vld [vmem:[#allocation2 + $0x4d0] ss:$8 sps:$4 sm:$0xff]  }
 0x319   :  { %1292 = vmatpush1.bf16.msra.mxu1 %v3233_v59  ;;  %v3264_v59 = vld [vmem:[#allocation2 + $0x4e0] ss:$8 sps:$4 sm:$0xff]  }
 0x31a   :  { %1293 = vmatprep.subr.bf16.mxu1 %v3238_v60  ;;  %v3265_v60 = vld [vmem:[#allocation2 + $0x470] ss:$8 sps:$4 sm:$0xff]  }
 0x31d   :  { %1294 = vmatpush1.bf16.msra.mxu1 %v3236_v61  ;;  %v3266_v61 = vld [vmem:[#allocation2 + $0x4f0] ss:$8 sps:$4 sm:$0xff]  }
 0x31e   :  { %1295 = vmatprep.subr.bf16.mxu1 %v3241_v62  ;;  %v1195_v62 = vld [vmem:[#allocation5 + $0x70] ss:$8 sm:$0x3] }
 0x327   :  { %v690_v1 = vpop.f32.mrb[4].mxu1 }
 0x328   :  { %v691_v2 = vadd.f32 %v690_v1, %v589_v63  ;;  %v2791_v3 = vpop.f32.mrb[5].mxu1  ;;  %v3244_v1 = vld [vmem:[#allocation2 + $0x3d4] ss:$8 sps:$4 sm:$0xff]  }
 0x329   :  { %v693_v4 = vpop.f32.mrb[6].mxu1  ;;  %v3247_v3 = vld [vmem:[#allocation2 + $0x3e4] ss:$8 sps:$4 sm:$0xff]  }
 0x32a   :  { %v713_v5 = vmax.f32 %v691_v2, 0.0  ;;  %v694_v6 = vadd.f32 %v693_v4, %v589_v63  ;;  %v2792_v7 = vpop.f32.mrb[7].mxu1  ;;  %v3242_v2 = vld [vmem:[#allocation2 + $0x3d0] ss:$8 sps:$4 sm:$0xff]   ;;  %v3245_v4 = vld [vmem:[#allocation2 + $0x3e0] ss:$8 sps:$4 sm:$0xff]  }
 0x32c   :  { %v714_v9 = vmax.f32 %v694_v6, 0.0  ;;  %v982_v6 = vld [vmem:[#allocation5 + $0x60] ss:$0 sm:$0xff] }
 0x32e   :  { %v719_v10 = vpack.c.bf16 %v714_v9, %v713_v5 }
 0x32f   :  { %v698_v12 = vpop.f32.mrb[8].mxu1 }
 0x330   :  { %2818 = vmatmul.mubr.bf16.vlgmr.msra.gmra.mrb[12].mxu0 %v719_v10  ;;  %v699_v13 = vadd.f32 %v698_v12, %v589_v63  ;;  %v2795_v14 = vpop.f32.mrb[9].mxu1 }
 0x331   :  { %2850 = vmatpush3.bf16.msra.mxu0 %v3216_v51  ;;  %v701_v15 = vpop.f32.mrb[10].mxu1  ;;  %2821 = vmatprep.mubr.msk.bf16.mxu0 %vm3440_vm1, %v3439_v8 }
 0x332   :  { %v715_v16 = vmax.f32 %v699_v13, 0.0  ;;  %v702_v17 = vadd.f32 %v701_v15, %v589_v63  ;;  %2851 = vmatprep.subr.bf16.mxu0 %v3217_v11  ;;  %v2796_v18 = vpop.f32.mrb[11].mxu1 }
 0x333   :  { %v3225_v18 = vld [vmem:[#allocation8 + $0x18] sm:$0xff]  }
 0x334   :  { %v716_v20 = vmax.f32 %v702_v17, 0.0  ;;  %v3224_v17 = vld [vmem:[#allocation8 + $0x10] sm:$0xff]  }
 0x335   :  { %2852 = vmatpush3.bf16.msra.mxu0 %v3217_v11 }
 0x336   :  { %v720_v21 = vpack.c.bf16 %v716_v20, %v715_v16  ;;  %2853 = vmatprep.subr.bf16.mxu0 %v3218_v19  ;;  %v3250_v20 = vld [vmem:[#allocation2 + $0x3f4] ss:$8 sps:$4 sm:$0xff]  }
 0x337   :  { %v706_v23 = vpop.f32.mrb[12].mxu1 }
 0x338   :  { %v707_v24 = vadd.f32 %v706_v23, %v589_v63  ;;  %v2799_v25 = vpop.f32.mrb[13].mxu1  ;;  %2822 = vmatmul.mubr.bf16.gmra.mrb[16].mxu0 %v720_v21  ;;  %v3248_v21 = vld [vmem:[#allocation2 + $0x3f0] ss:$8 sps:$4 sm:$0xff]  }
 0x339   :  { %2854 = vmatpush3.bf16.msra.mxu0 %v3218_v19  ;;  %v709_v26 = vpop.f32.mrb[14].mxu1  ;;  %2825 = vmatprep.mubr.msk.bf16.mxu0 %vm3440_vm1, %v3439_v8  ;;  %v3226_v19 = vld [vmem:[#allocation8 + $0x20] sm:$0xff]   ;;  %v3253_v23 = vld [vmem:[#allocation2 + $0x410] ss:$8 sps:$4 sm:$0xff]  }
 0x33a   :  { %v717_v27 = vmax.f32 %v707_v24, 0.0  ;;  %v710_v28 = vadd.f32 %v709_v26, %v589_v63  ;;  %2855 = vmatprep.subr.bf16.mxu0 %v3219_v22  ;;  %v2800_v29 = vpop.f32.mrb[15].mxu1  ;;  %v3239_v63 = vld [vmem:[#allocation2 + $0x3c0] ss:$8 sps:$4 sm:$0xff]   ;;  %v3257_v25 = vld [vmem:[#allocation2 + $0x430] ss:$8 sps:$4 sm:$0xff]  }
 0x33b   :  { %1296 = vmatpush1.bf16.msra.mxu1 %v3239_v63  ;;  %v3255_v24 = vld [vmem:[#allocation2 + $0x420] ss:$8 sps:$4 sm:$0xff]   ;;  %v1200_v63 = vrot.slane %v1195_v62, %v98_v37 }
 0x33c   :  { %v718_v31 = vmax.f32 %v710_v28, 0.0  ;;  %1297 = vmatprep.subr.bf16.mxu1 %v3244_v1  ;;  %v3259_v26 = vld [vmem:[#allocation2 + $0x440] ss:$8 sps:$4 sm:$0xff]   ;;  %v1204_v1 = vrot.slane %v1195_v62, %v102_v39 }
 0x33d   :  { %2856 = vmatpush3.bf16.msra.mxu0 %v3219_v22  ;;  %v3251_v22 = vld [vmem:[#allocation2 + $0x400] ss:$8 sps:$4 sm:$0xff]  }
 0x33e   :  { %v721_v32 = vpack.c.bf16 %v718_v31, %v717_v27  ;;  %2857 = vmatprep.subr.bf16.mxu0 %v3220_v30  ;;  %v3261_v27 = vld [vmem:[#allocation2 + $0x450] ss:$8 sps:$4 sm:$0xff]   ;;  %v738_v28 = vld [vmem:[#allocation5 + $0x40] ss:$0 sm:$0xff] }
 0x33f   :  { %1298 = vmatpush1.bf16.msra.mxu1 %v3242_v2 }
 0x340   :  { %2826 = vmatmul.mubr.bf16.gmra.mrb[20].mxu0 %v721_v32  ;;  %1299 = vmatprep.subr.bf16.mxu1 %v3247_v3 }
 0x341   :  { %2858 = vmatpush3.bf16.msra.mxu0 %v3220_v30 }
 0x342   :  { %2859 = vmatprep.subr.bf16.mxu0 %v3221_v33 }
 0x343   :  { %1300 = vmatpush1.bf16.msra.mxu1 %v3245_v4 }
 0x344   :  { %1301 = vmatprep.subr.bf16.mxu1 %v3250_v20 }
 0x345   :  { %2860 = vmatpush3.bf16.msra.mxu0 %v3221_v33 }
 0x346   :  { %2861 = vmatprep.subr.bf16.mxu0 %v3222_v34 }
 0x347   :  { %1302 = vmatpush1.bf16.msra.mxu1 %v3248_v21 }
 0x348   :  { %2913 = vmatprep.subr.bf16.mxu1 %v3439_v8 }
 0x349   :  { %2862 = vmatpush3.bf16.msra.mxu0 %v3222_v34 }
 0x34a   :  { %2863 = vmatprep.subr.bf16.mxu0 %v3223_v35 }
 0x34d   :  { %2864 = vmatpush3.bf16.msra.mxu0 %v3223_v35  ;;  %v3252_v35 = vld [vmem:[#allocation2 + $0x480] ss:$8 sps:$4 sm:$0xff]  }
 0x34e   :  { %2869 = vmatprep.subr.bf16.mxu0 %v3439_v8 }
 0x3e3   :  { %v2847_v40 = vpop.f32.mrb[16].mxu1 }
 0x3e4   :  { %v954_v41 = vadd.f32 %v2847_v40, %v862_v38  ;;  %v945_v42 = vpop.f32.mrb[17].mxu1 }
 0x3e5   :  { %v946_v43 = vadd.f32 %v945_v42, %v862_v38  ;;  %v2848_v44 = vpop.f32.mrb[18].mxu1 }
 0x3e6   :  { %v957_v45 = vadd.f32 %v2848_v44, %v862_v38  ;;  %v948_v46 = vpop.f32.mrb[19].mxu1  ;;  %v962_v48 = vmax.f32 %v954_v41, 0.0  ;;  %v3254_v41 = vld [vmem:[#allocation2 + $0x490] ss:$8 sps:$4 sm:$0xff]  }
 0x3e7   :  { %v949_v47 = vadd.f32 %v948_v46, %v862_v38  ;;  %v960_v50 = vmax.f32 %v946_v43, 0.0 }
 0x3e8   :  { %v963_v49 = vmax.f32 %v957_v45, 0.0 }
 0x3e9   :  { %v961_v51 = vmax.f32 %v949_v47, 0.0  ;;  %v3256_v47 = vld [vmem:[#allocation2 + $0x4a0] ss:$8 sps:$4 sm:$0xff]  }
 0x3ea   :  { %v965_v52 = vpack.c.bf16 %v963_v49, %v962_v48 }
 0x3eb   :  { %v964_v53 = vpack.c.bf16 %v961_v51, %v960_v50  ;;  %v3258_v50 = vld [vmem:[#allocation2 + $0x4b0] ss:$8 sps:$4 sm:$0xff]  }
 0x3ed   :  { %2865 = vmatprep.mubr.bf16.mxu0 %v964_v53 }
 0x3ee   :  { %2866 = vmatmul.mubr.bf16.vlgmr.msra.gmra.mrb[24].mxu0 %v965_v52 }
 0x3ef   :  { %2873 = vmatprep.mubr.msk.bf16.mxu0 %vm3440_vm1, %v3439_v8 }
 0x4c1   :  { %v2867_v5 = vpop.f32.mrb[24].mxu0 }
 0x4c2   :  { %v1065_v7 = vpop.f32.mrb[25].mxu0  ;;  %v1074_v10 = vadd.f32 %v2867_v5, %v982_v6 }
 0x4c3   :  { %v2868_v9 = vpop.f32.mrb[26].mxu0  ;;  %v1066_v13 = vadd.f32 %v1065_v7, %v982_v6 }
 0x4c4   :  { %v1077_v11 = vadd.f32 %v2868_v9, %v982_v6  ;;  %v1068_v12 = vpop.f32.mrb[27].mxu0 }
 0x4c5   :  { %v1069_v14 = vadd.f32 %v1068_v12, %v982_v6 }
 0x4c6   :  { %v1087_v15 = vpack.c.bf16 %v1077_v11, %v1074_v10 }
 0x4c7   :  { %v1086_v16 = vpack.c.bf16 %v1069_v14, %v1066_v13 }
 0x4c9   :  { %2870 = vmatpush3.bf16.msra.mxu0 %v1086_v16 }
 0x4ca   :  { %2871 = vmatprep.subr.bf16.mxu0 %v3439_v8 }
 0x4cd   :  { %2872 = vmatpush3.bf16.msra.mxu0 %v1087_v15 }
 0x4ce   :  { %2885 = vmatprep.subr.bf16.mxu0 %v3439_v8 }
 0x4d0   :  { %2874 = vmatmul.mubr.msk.bf16.vlgmr.msra.gmra.mrb[12].mxu0 %vm507_vm0, %v3224_v17 }
 0x4d1   :  { %2877 = vmatprep.mubr.msk.bf16.mxu0 %vm3440_vm1, %v3439_v8  ;;  %2886 = vmatpush3.bf16.msra.mxu0 %v3251_v22 }
 0x4d2   :  { %2887 = vmatprep.subr.bf16.mxu0 %v3439_v8 }
 0x4d5   :  { %2888 = vmatpush3.bf16.msra.mxu0 %v3253_v23 }
 0x4d6   :  { %2889 = vmatprep.subr.bf16.mxu0 %v3439_v8 }
 0x4d8   :  { %2878 = vmatmul.mubr.msk.bf16.gmra.mrb[16].mxu0 %vm507_vm0, %v3225_v18 }
 0x4d9   :  { %2881 = vmatprep.mubr.msk.bf16.mxu0 %vm3440_vm1, %v3439_v8  ;;  %2890 = vmatpush3.bf16.msra.mxu0 %v3255_v24 }
 0x4da   :  { %2891 = vmatprep.subr.bf16.mxu0 %v3439_v8 }
 0x4dd   :  { %2892 = vmatpush3.bf16.msra.mxu0 %v3257_v25 }
 0x4de   :  { %2893 = vmatprep.subr.bf16.mxu0 %v3439_v8 }
 0x4e0   :  { %2882 = vmatmul.mubr.msk.bf16.gmra.mrb[20].mxu0 %vm507_vm0, %v3226_v19 }
 0x4e1   :  { %2901 = vmatprep.mubr.msk.bf16.mxu0 %vm3440_vm1, %v3439_v8  ;;  %2894 = vmatpush3.bf16.msra.mxu0 %v3259_v26 }
 0x4e2   :  { %2895 = vmatprep.subr.bf16.mxu0 %v3439_v8 }
 0x4e5   :  { %2896 = vmatpush3.bf16.msra.mxu0 %v3261_v27 }
 0x4e6   :  { %2897 = vmatprep.subr.bf16.mxu0 %v3439_v8 }
 0x5a3   :  { %v1146_v29 = vpop.f32.mrb[12].mxu0 }
 0x5a4   :  { %v2875_v30 = vpop.f32.mrb[13].mxu0  ;;  %v3081_v32 = vadd.f32 %v1146_v29, %v738_v28 }
 0x5a5   :  { %v1149_v31 = vpop.f32.mrb[14].mxu0 }
 0x5a6   :  { %v3082_v33 = vadd.f32 %v1149_v31, %v738_v28  ;;  %v2876_v34 = vpop.f32.mrb[15].mxu0 }
 0x5a8   :  { %v1175_v38 = vpack.c.bf16 %v3082_v33, %v3081_v32 }
 0x5aa   :  { %1320 = vmatmul.mubr.bf16.vlgmr.msra.gmra.mrb[20].mxu1 %v1175_v38 }
 0x5ab   :  { %v1154_v40 = vpop.f32.mrb[16].mxu0  ;;  %1329 = vmatprep.mubr.bf16.mxu1 %v3438_v0  ;;  %2914 = vmatpush3.bf16.msra.mxu1 %v3252_v35 }
 0x5ac   :  { %v2879_v42 = vpop.f32.mrb[17].mxu0  ;;  %2915 = vmatprep.subr.bf16.mxu1 %v3439_v8  ;;  %v3083_v44 = vadd.f32 %v1154_v40, %v738_v28 }
 0x5ad   :  { %v1157_v43 = vpop.f32.mrb[18].mxu0 }
 0x5ae   :  { %v3084_v45 = vadd.f32 %v1157_v43, %v738_v28  ;;  %v2880_v46 = vpop.f32.mrb[19].mxu0 }
 0x5af   :  { %2916 = vmatpush3.bf16.msra.mxu1 %v3254_v41 }
 0x5b0   :  { %v1176_v48 = vpack.c.bf16 %v3084_v45, %v3083_v44  ;;  %2917 = vmatprep.subr.bf16.mxu1 %v3439_v8 }
 0x5b2   :  { %1330 = vmatmul.mubr.bf16.gmra.mrb[24].mxu1 %v1176_v48 }
 0x5b3   :  { %v1162_v49 = vpop.f32.mrb[20].mxu0  ;;  %1339 = vmatprep.mubr.bf16.mxu1 %v3438_v0  ;;  %2918 = vmatpush3.bf16.msra.mxu1 %v3256_v47  ;;  %v3263_v0 = vld [vmem:[#allocation2 + $0x460] ss:$8 sps:$4 sm:$0xff]   ;;  %v1506_v47 = vld [vmem:[#allocation5 + $0x90] ss:$0 sm:$0xff] }
 0x5b4   :  { %v2883_v51 = vpop.f32.mrb[21].mxu0  ;;  %2919 = vmatprep.subr.bf16.mxu1 %v3439_v8  ;;  %v3085_v53 = vadd.f32 %v1162_v49, %v738_v28  ;;  %2898 = vmatpush3.bf16.msra.mxu0 %v3263_v0 }
 0x5b5   :  { %v1165_v52 = vpop.f32.mrb[22].mxu0  ;;  %2899 = vmatprep.subr.bf16.mxu0 %v3439_v8 }
 0x5b6   :  { %v3086_v54 = vadd.f32 %v1165_v52, %v738_v28  ;;  %v2884_v55 = vpop.f32.mrb[23].mxu0 }
 0x5b7   :  { %2920 = vmatpush3.bf16.msra.mxu1 %v3258_v50 }
 0x5b8   :  { %v1177_v57 = vpack.c.bf16 %v3086_v54, %v3085_v53  ;;  %2921 = vmatprep.subr.bf16.mxu1 %v3439_v8  ;;  %2900 = vmatpush3.bf16.msra.mxu0 %v3265_v60 }
 0x5ba   :  { %1340 = vmatmul.mubr.bf16.gmra.mrb[28].mxu1 %v1177_v57 }
 0x5bb   :  { %2922 = vmatpush3.bf16.msra.mxu1 %v3260_v56  ;;  %2929 = vmatprep.mubr.msk.bf16.mxu1 %vm3440_vm1, %v3439_v8 }
 0x5bc   :  { %2923 = vmatprep.subr.bf16.mxu1 %v3439_v8 }
 0x5bf   :  { %2924 = vmatpush3.bf16.msra.mxu1 %v3262_v58 }
 0x5c0   :  { %2925 = vmatprep.subr.bf16.mxu1 %v3439_v8 }
 0x5c3   :  { %2926 = vmatpush3.bf16.msra.mxu1 %v3264_v59 }
 0x5c4   :  { %2927 = vmatprep.subr.bf16.mxu1 %v3439_v8 }
 0x5c7   :  { %2928 = vmatpush3.bf16.msra.mxu1 %v3266_v61 }
 0x5c8   :  { %2941 = vmatprep.subr.bf16.mxu1 %v3439_v8 }
 0x67d   :  { %v1321_v2 = vpop.f32.mrb[20].mxu1 }
 0x67e   :  { %v1322_v3 = vadd.f32 %v1321_v2, %v1200_v63  ;;  %v1323_v4 = vpop.f32.mrb[21].mxu1 }
 0x67f   :  { %v1324_v5 = vadd.f32 %v1323_v4, %v1204_v1  ;;  %v1325_v6 = vpop.f32.mrb[22].mxu1 }
 0x680   :  { %v1326_v7 = vadd.f32 %v1325_v6, %v1200_v63  ;;  %v1327_v9 = vpop.f32.mrb[23].mxu1  ;;  %v1350_v11 = vmax.f32 %v1322_v3, 0.0 }
 0x681   :  { %v1328_v10 = vadd.f32 %v1327_v9, %v1204_v1  ;;  %v1351_v13 = vmax.f32 %v1324_v5, 0.0 }
 0x682   :  { %v1352_v12 = vmax.f32 %v1326_v7, 0.0 }
 0x683   :  { %v1353_v14 = vmax.f32 %v1328_v10, 0.0 }
 0x684   :  { %v1362_v15 = vpack.c.bf16 %v1352_v12, %v1350_v11 }
 0x685   :  { %v1363_v16 = vpack.c.bf16 %v1353_v14, %v1351_v13  ;;  %v1331_v17 = vpop.f32.mrb[24].mxu1 }
 0x686   :  { %v1332_v18 = vadd.f32 %v1331_v17, %v1200_v63  ;;  %v1333_v37 = vpop.f32.mrb[25].mxu1  ;;  %2902 = vmatmul.mubr.bf16.vlgmr.msra.gmra.mrb[28].mxu0 %v1362_v15  ;;  %v3270_v15 = vld [vmem:[#allocation2 + $0x500] ss:$8 sps:$4 sm:$0xff]   ;;  %v3267_v17 = vld [vmem:[#allocation8 + $0x28] sm:$0xff]  }
 0x687   :  { %v1334_v36 = vadd.f32 %v1333_v37, %v1204_v1  ;;  %v1335_v39 = vpop.f32.mrb[26].mxu1  ;;  %2930 = vmatmul.mubr.bf16.vlgmr.msra.gmra.mrb[32].mxu1 %v1363_v16  ;;  %2905 = vmatprep.mubr.msk.bf16.mxu0 %vm3440_vm1, %v3439_v8  ;;  %v3272_v37 = vld [vmem:[#allocation2 + $0x520] ss:$8 sps:$4 sm:$0xff]  }
 0x688   :  { %v1336_v19 = vadd.f32 %v1335_v39, %v1200_v63  ;;  %v1337_v20 = vpop.f32.mrb[27].mxu1  ;;  %2933 = vmatprep.mubr.msk.bf16.mxu1 %vm3440_vm1, %v3439_v8  ;;  %v1354_v22 = vmax.f32 %v1332_v18, 0.0  ;;  %v3271_v18 = vld [vmem:[#allocation2 + $0x510] ss:$8 sps:$4 sm:$0xff]  }
 0x689   :  { %v1338_v21 = vadd.f32 %v1337_v20, %v1204_v1  ;;  %v1355_v24 = vmax.f32 %v1334_v36, 0.0  ;;  %v3268_v36 = vld [vmem:[#allocation8 + $0x30] sm:$0xff]   ;;  %v3269_v20 = vld [vmem:[#allocation8 + $0x38] sm:$0xff]  }
 0x68a   :  { %v1356_v23 = vmax.f32 %v1336_v19, 0.0  ;;  %v3273_v39 = vld [vmem:[#allocation2 + $0x530] ss:$8 sps:$4 sm:$0xff]   ;;  %v3274_v19 = vld [vmem:[#allocation2 + $0x540] ss:$8 sps:$4 sm:$0xff]  }
 0x68b   :  { %v1357_v25 = vmax.f32 %v1338_v21, 0.0  ;;  %v3278_v21 = vld [vmem:[#allocation7] sm:$0xff]  }
 0x68c   :  { %v1364_v26 = vpack.c.bf16 %v1356_v23, %v1354_v22  ;;  %v3275_v22 = vld [vmem:[#allocation2 + $0x550] ss:$8 sps:$4 sm:$0xff]   ;;  %v3276_v23 = vld [vmem:[#allocation2 + $0x560] ss:$8 sps:$4 sm:$0xff]  }
 0x68d   :  { %v1365_v27 = vpack.c.bf16 %v1357_v25, %v1355_v24  ;;  %v1341_v28 = vpop.f32.mrb[28].mxu1  ;;  %v3277_v24 = vld [vmem:[#allocation2 + $0x570] ss:$8 sps:$4 sm:$0xff]   ;;  %v3279_v25 = vld [vmem:[#allocation7 + $0x8] sm:$0xff]  }
 0x68e   :  { %v1342_v29 = vadd.f32 %v1341_v28, %v1200_v63  ;;  %v1343_v30 = vpop.f32.mrb[29].mxu1  ;;  %2906 = vmatmul.mubr.bf16.gmra.mrb[32].mxu0 %v1364_v26  ;;  %v3280_v26 = vld [vmem:[#allocation2 + $0x600] ss:$8 sps:$4 sm:$0xff]   ;;  %v3281_v28 = vld [vmem:[#allocation2 + $0x610] ss:$8 sps:$4 sm:$0xff]  }
 0x68f   :  { %v1344_v31 = vadd.f32 %v1343_v30, %v1204_v1  ;;  %v1345_v32 = vpop.f32.mrb[30].mxu1  ;;  %2934 = vmatmul.mubr.bf16.gmra.mrb[36].mxu1 %v1365_v27  ;;  %2909 = vmatprep.mubr.msk.bf16.mxu0 %vm3440_vm1, %v3439_v8  ;;  %v3284_v27 = vld [vmem:[#allocation7 + $0x10] sm:$0xff]   ;;  %v3282_v30 = vld [vmem:[#allocation2 + $0x620] ss:$8 sps:$4 sm:$0xff]  }
 0x690   :  { %v1346_v33 = vadd.f32 %v1345_v32, %v1200_v63  ;;  %v1347_v34 = vpop.f32.mrb[31].mxu1  ;;  %2937 = vmatprep.mubr.msk.bf16.mxu1 %vm3440_vm1, %v3439_v8  ;;  %v1358_v38 = vmax.f32 %v1342_v29, 0.0  ;;  %v3286_v29 = vld [vmem:[#allocation7 + $0x18] sm:$0xff]   ;;  %v3285_v32 = vld [vmem:[#allocation2 + $0x640] ss:$8 sps:$4 sm:$0xff]  }
 0x691   :  { %v1348_v35 = vadd.f32 %v1347_v34, %v1204_v1  ;;  %v1359_v41 = vmax.f32 %v1344_v31, 0.0  ;;  %v3283_v31 = vld [vmem:[#allocation2 + $0x630] ss:$8 sps:$4 sm:$0xff]   ;;  %v3288_v34 = vld [vmem:[#allocation2 + $0x660] ss:$8 sps:$4 sm:$0xff]  }
 0x692   :  { %v1360_v40 = vmax.f32 %v1346_v33, 0.0  ;;  %v3287_v33 = vld [vmem:[#allocation2 + $0x650] ss:$8 sps:$4 sm:$0xff]  }
 0x693   :  { %v1361_v42 = vmax.f32 %v1348_v35, 0.0  ;;  %v3289_v35 = vld [vmem:[#allocation2 + $0x670] ss:$8 sps:$4 sm:$0xff]  }
 0x694   :  { %v1366_v43 = vpack.c.bf16 %v1360_v40, %v1358_v38  ;;  %v3290_v38 = vld [vmem:[#allocation2 + $0x580] ss:$8 sps:$4 sm:$0xff]   ;;  %v3291_v40 = vld [vmem:[#allocation2 + $0x590] ss:$8 sps:$4 sm:$0xff]  }
 0x695   :  { %v1367_v44 = vpack.c.bf16 %v1361_v42, %v1359_v41  ;;  %2983 = vmatprep.subr.bf16.mxu0 %v3290_v38  ;;  %v3292_v41 = vld [vmem:[#allocation2 + $0x5a0] ss:$8 sps:$4 sm:$0xff]   ;;  %v3293_v42 = vld [vmem:[#allocation2 + $0x5b0] ss:$8 sps:$4 sm:$0xff]  }
 0x696   :  { %2910 = vmatmul.mubr.bf16.gmra.mrb[36].mxu0 %v1366_v43  ;;  %v3294_v43 = vld [vmem:[#allocation2 + $0x5c0] ss:$8 sps:$4 sm:$0xff]  }
 0x697   :  { %2938 = vmatmul.mubr.bf16.gmra.mrb[40].mxu1 %v1367_v44  ;;  %2984 = vmatpush3.bf16.msra.mxu0 %v3290_v38  ;;  %v3295_v44 = vld [vmem:[#allocation2 + $0x5d0] ss:$8 sps:$4 sm:$0xff]  }
 0x698   :  { %2947 = vmatprep.mubr.msk.bf16.mxu1 %vm3440_vm1, %v3439_v8  ;;  %2985 = vmatprep.subr.bf16.mxu0 %v3291_v40 }
 0x69b   :  { %2986 = vmatpush3.bf16.msra.mxu0 %v3291_v40 }
 0x69c   :  { %2987 = vmatprep.subr.bf16.mxu0 %v3292_v41 }
 0x69f   :  { %2988 = vmatpush3.bf16.msra.mxu0 %v3292_v41 }
 0x6a0   :  { %2989 = vmatprep.subr.bf16.mxu0 %v3293_v42 }
 0x6a3   :  { %2990 = vmatpush3.bf16.msra.mxu0 %v3293_v42  ;;  %v3300_v42 = vld [vmem:[#allocation2 + $0x6a0] ss:$8 sps:$4 sm:$0xff]  }
 0x6a4   :  { %2991 = vmatprep.subr.bf16.mxu0 %v3294_v43 }
 0x6a7   :  { %2992 = vmatpush3.bf16.msra.mxu0 %v3294_v43 }
 0x6a8   :  { %2993 = vmatprep.subr.bf16.mxu0 %v3295_v44 }
 0x6ab   :  { %2994 = vmatpush3.bf16.msra.mxu0 %v3295_v44  ;;  %v3301_v44 = vld [vmem:[#allocation2 + $0x6b0] ss:$8 sps:$4 sm:$0xff]  }
 0x759   :  { %v3607_v45 = vpop.f32.mrb[28].mxu0 }
 0x75a   :  { %v2903_v46 = vpop.f32.mrb[29].mxu0  ;;  %v1589_v48 = vpop.f32.mrb[32].mxu1 }
 0x75b   :  { %v3609_v49 = vpop.f32.mrb[30].mxu0  ;;  %v2931_v50 = vpop.f32.mrb[33].mxu1  ;;  %v1590_v53 = vadd.f32 %v1589_v48, %v1506_v47  ;;  %v3296_v46 = vld [vmem:[#allocation2 + $0x5e0] ss:$8 sps:$4 sm:$0xff]  }
 0x75c   :  { %v2904_v51 = vpop.f32.mrb[31].mxu0  ;;  %v1592_v52 = vpop.f32.mrb[34].mxu1  ;;  %2995 = vmatprep.subr.bf16.mxu0 %v3296_v46  ;;  %v1384_v48 = vld [vmem:[#allocation5 + $0x80] ss:$0 sm:$0xff] }
 0x75d   :  { %v1593_v54 = vadd.f32 %v1592_v52, %v1506_v47  ;;  %v2932_v55 = vpop.f32.mrb[35].mxu1  ;;  %2996 = vmatpush3.bf16.msra.mxu0 %v3296_v46  ;;  %v1468_v50 = vadd.f32 %v3607_v45, %v1384_v48  ;;  %v1471_v52 = vadd.f32 %v3609_v49, %v1384_v48  ;;  %v3302_v46 = vld [vmem:[#allocation2 + $0x6c0] ss:$8 sps:$4 sm:$0xff]  }
 0x75f   :  { %v1618_v56 = vpack.c.bf16 %v1593_v54, %v1590_v53 }
 0x761   :  { %v3611_v57 = vpop.f32.mrb[32].mxu0  ;;  %2942 = vmatpush3.bf16.msra.mxu1 %v1618_v56 }
 0x762   :  { %v2907_v58 = vpop.f32.mrb[33].mxu0  ;;  %v1597_v0 = vpop.f32.mrb[36].mxu1  ;;  %2943 = vmatprep.subr.bf16.mxu1 %v3439_v8 }
 0x763   :  { %v3614_v59 = vpop.f32.mrb[34].mxu0  ;;  %v2935_v60 = vpop.f32.mrb[37].mxu1  ;;  %v1598_v63 = vadd.f32 %v1597_v0, %v1506_v47 }
 0x764   :  { %v2908_v61 = vpop.f32.mrb[35].mxu0  ;;  %v1600_v62 = vpop.f32.mrb[38].mxu1  ;;  %v1476_v60 = vadd.f32 %v3611_v57, %v1384_v48 }
 0x765   :  { %v1601_v1 = vadd.f32 %v1600_v62, %v1506_v47  ;;  %v2936_v2 = vpop.f32.mrb[39].mxu1  ;;  %v1479_v62 = vadd.f32 %v3614_v59, %v1384_v48 }
 0x767   :  { %v1619_v3 = vpack.c.bf16 %v1601_v1, %v1598_v63 }
 0x769   :  { %v3616_v4 = vpop.f32.mrb[36].mxu0  ;;  %2944 = vmatpush3.bf16.msra.mxu1 %v1619_v3 }
 0x76a   :  { %v2911_v5 = vpop.f32.mrb[37].mxu0  ;;  %v1605_v6 = vpop.f32.mrb[40].mxu1  ;;  %2945 = vmatprep.subr.bf16.mxu1 %v3439_v8 }
 0x76b   :  { %v3619_v7 = vpop.f32.mrb[38].mxu0  ;;  %v2939_v9 = vpop.f32.mrb[41].mxu1  ;;  %v1606_v12 = vadd.f32 %v1605_v6, %v1506_v47  ;;  %v1484_v5 = vadd.f32 %v3616_v4, %v1384_v48 }
 0x76c   :  { %v2912_v10 = vpop.f32.mrb[39].mxu0  ;;  %v1608_v11 = vpop.f32.mrb[42].mxu1  ;;  %v1487_v57 = vadd.f32 %v3619_v7, %v1384_v48  ;;  %v3304_v48 = vld [vmem:[#allocation2 + $0x6e0] ss:$8 sps:$4 sm:$0xff]  }
 0x76d   :  { %v1609_v13 = vadd.f32 %v1608_v11, %v1506_v47  ;;  %v2940_v14 = vpop.f32.mrb[43].mxu1  ;;  %v3297_v47 = vld [vmem:[#allocation2 + $0x5f0] ss:$8 sps:$4 sm:$0xff]  }
 0x76e   :  { %2997 = vmatprep.subr.bf16.mxu0 %v3297_v47  ;;  %v1733_v14 = vld [vmem:[#allocation5 + $0xa0] ss:$0 sm:$0xff] }
 0x76f   :  { %v1620_v16 = vpack.c.bf16 %v1609_v13, %v1606_v12  ;;  %2998 = vmatpush3.bf16.msra.mxu0 %v3297_v47  ;;  %v3303_v47 = vld [vmem:[#allocation2 + $0x6d0] ss:$8 sps:$4 sm:$0xff]  }
 0x770   :  { %3035 = vmatprep.subr.bf16.mxu0 %v3439_v8 }
 0x771   :  { %2946 = vmatpush3.bf16.msra.mxu1 %v1620_v16 }
 0x772   :  { %2959 = vmatprep.subr.bf16.mxu1 %v3270_v15 }
 0x774   :  { %2948 = vmatmul.mubr.msk.bf16.vlgmr.msra.gmra.mrb[44].mxu1 %vm1636_vm2, %v3267_v17 }
 0x775   :  { %2951 = vmatprep.mubr.msk.bf16.mxu1 %vm3440_vm1, %v3439_v8  ;;  %2960 = vmatpush3.bf16.msra.mxu1 %v3270_v15 }
 0x776   :  { %2961 = vmatprep.subr.bf16.mxu1 %v3271_v18 }
 0x779   :  { %2962 = vmatpush3.bf16.msra.mxu1 %v3271_v18 }
 0x77a   :  { %2963 = vmatprep.subr.bf16.mxu1 %v3272_v37 }
 0x77c   :  { %2952 = vmatmul.mubr.msk.bf16.gmra.mrb[48].mxu1 %vm1636_vm2, %v3268_v36 }
 0x77d   :  { %2955 = vmatprep.mubr.msk.bf16.mxu1 %vm3440_vm1, %v3439_v8  ;;  %2964 = vmatpush3.bf16.msra.mxu1 %v3272_v37 }
 0x77e   :  { %2965 = vmatprep.subr.bf16.mxu1 %v3273_v39 }
 0x781   :  { %2966 = vmatpush3.bf16.msra.mxu1 %v3273_v39 }
 0x782   :  { %2967 = vmatprep.subr.bf16.mxu1 %v3274_v19 }
 0x784   :  { %2956 = vmatmul.mubr.msk.bf16.gmra.mrb[52].mxu1 %vm1636_vm2, %v3269_v20 }
 0x785   :  { %2968 = vmatpush3.bf16.msra.mxu1 %v3274_v19  ;;  %2975 = vmatprep.mubr.bf16.mxu1 %v3278_v21 }
 0x786   :  { %2969 = vmatprep.subr.bf16.mxu1 %v3275_v22 }
 0x789   :  { %2970 = vmatpush3.bf16.msra.mxu1 %v3275_v22 }
 0x78a   :  { %2971 = vmatprep.subr.bf16.mxu1 %v3276_v23 }
 0x78d   :  { %2972 = vmatpush3.bf16.msra.mxu1 %v3276_v23 }
 0x78e   :  { %2973 = vmatprep.subr.bf16.mxu1 %v3277_v24 }
 0x791   :  { %2974 = vmatpush3.bf16.msra.mxu1 %v3277_v24  ;;  %v3298_v24 = vld [vmem:[#allocation2 + $0x680] ss:$8 sps:$4 sm:$0xff]  }
 0x792   :  { %3007 = vmatprep.subr.bf16.mxu1 %v3439_v8 }
 0x794   :  { %2976 = vmatmul.mubr.bf16.vlgmr.msra.gmra.mrb[56].mxu1 %v3279_v25 }
 0x795   :  { %3008 = vmatpush3.bf16.msra.mxu1 %v3280_v26  ;;  %2979 = vmatprep.mubr.bf16.mxu1 %v3284_v27 }
 0x796   :  { %3009 = vmatprep.subr.bf16.mxu1 %v3439_v8 }
 0x799   :  { %3010 = vmatpush3.bf16.msra.mxu1 %v3281_v28 }
 0x79a   :  { %3011 = vmatprep.subr.bf16.mxu1 %v3439_v8 }
 0x79c   :  { %2980 = vmatmul.mubr.bf16.gmra.mrb[60].mxu1 %v3286_v29 }
 0x79d   :  { %3012 = vmatpush3.bf16.msra.mxu1 %v3282_v30  ;;  %3023 = vmatprep.mubr.msk.bf16.mxu1 %vm3440_vm1, %v3439_v8 }
 0x79e   :  { %3013 = vmatprep.subr.bf16.mxu1 %v3439_v8 }
 0x7a1   :  { %3014 = vmatpush3.bf16.msra.mxu1 %v3283_v31 }
 0x7a2   :  { %3015 = vmatprep.subr.bf16.mxu1 %v3439_v8 }
 0x7a5   :  { %3016 = vmatpush3.bf16.msra.mxu1 %v3285_v32 }
 0x7a6   :  { %3017 = vmatprep.subr.bf16.mxu1 %v3439_v8 }
 0x7a9   :  { %3018 = vmatpush3.bf16.msra.mxu1 %v3287_v33  ;;  %v3299_v33 = vld [vmem:[#allocation2 + $0x690] ss:$8 sps:$4 sm:$0xff]  }
 0x7aa   :  { %3019 = vmatprep.subr.bf16.mxu1 %v3439_v8 }
 0x7ad   :  { %3020 = vmatpush3.bf16.msra.mxu1 %v3288_v34 }
 0x7ae   :  { %3021 = vmatprep.subr.bf16.mxu1 %v3439_v8 }
 0x7b1   :  { %3022 = vmatpush3.bf16.msra.mxu1 %v3289_v35 }
 0x847   :  { %v1680_v51 = vpop.f32.mrb[44].mxu1 }
 0x848   :  { %v1703_v53 = vadd.f32 %v1680_v51, %v1468_v50  ;;  %v2949_v54 = vpop.f32.mrb[45].mxu1  ;;  %v3305_v50 = vld [vmem:[#allocation2 + $0x6f0] ss:$8 sps:$4 sm:$0xff]   ;;  %v2032_v51 = vld [vmem:[#allocation5 + $0xc0] ss:$0 sm:$0xff] }
 0x849   :  { %v1683_v55 = vpop.f32.mrb[46].mxu1 }
 0x84a   :  { %v1704_v56 = vadd.f32 %v1683_v55, %v1471_v52  ;;  %v2950_v58 = vpop.f32.mrb[47].mxu1 }
 0x84c   :  { %v2013_v0 = vpack.c.bf16 %v1704_v56, %v1703_v53 }
 0x84e   :  { %3024 = vmatmul.mubr.bf16.vlgmr.msra.gmra.mrb[64].mxu1 %v2013_v0 }
 0x84f   :  { %v1688_v61 = vpop.f32.mrb[48].mxu1  ;;  %3027 = vmatprep.mubr.msk.bf16.mxu1 %vm3440_vm1, %v3439_v8 }
 0x850   :  { %v1705_v63 = vadd.f32 %v1688_v61, %v1476_v60  ;;  %v2953_v45 = vpop.f32.mrb[49].mxu1 }
 0x851   :  { %v1691_v1 = vpop.f32.mrb[50].mxu1 }
 0x852   :  { %v1706_v2 = vadd.f32 %v1691_v1, %v1479_v62  ;;  %v2954_v49 = vpop.f32.mrb[51].mxu1 }
 0x854   :  { %v2014_v3 = vpack.c.bf16 %v1706_v2, %v1705_v63 }
 0x856   :  { %3028 = vmatmul.mubr.bf16.gmra.mrb[68].mxu1 %v2014_v3 }
 0x857   :  { %v1696_v6 = vpop.f32.mrb[52].mxu1  ;;  %3031 = vmatprep.mubr.msk.bf16.mxu1 %vm3440_vm1, %v3439_v8 }
 0x858   :  { %v1707_v9 = vadd.f32 %v1696_v6, %v1484_v5  ;;  %v2957_v10 = vpop.f32.mrb[53].mxu1 }
 0x859   :  { %v1699_v11 = vpop.f32.mrb[54].mxu1 }
 0x85a   :  { %v1708_v12 = vadd.f32 %v1699_v11, %v1487_v57  ;;  %v2958_v59 = vpop.f32.mrb[55].mxu1 }
 0x85c   :  { %v2015_v13 = vpack.c.bf16 %v1708_v12, %v1707_v9 }
 0x85e   :  { %3032 = vmatmul.mubr.bf16.gmra.mrb[72].mxu1 %v2015_v13 }
 0x867   :  { %v2977_v15 = vpop.f32.mrb[56].mxu1 }
 0x868   :  { %v1849_v16 = vadd.f32 %v2977_v15, %v1733_v14  ;;  %v1840_v17 = vpop.f32.mrb[57].mxu1 }
 0x869   :  { %v1841_v18 = vadd.f32 %v1840_v17, %v1733_v14  ;;  %v2978_v4 = vpop.f32.mrb[58].mxu1  ;;  %v2163_v17 = vld [vmem:[#allocation5 + $0xd0] ss:$0 sm:$0xff] }
 0x86a   :  { %v1873_v37 = vmax.f32 %v1849_v16, 0.0  ;;  %v1852_v36 = vadd.f32 %v2978_v4, %v1733_v14  ;;  %v1843_v39 = vpop.f32.mrb[59].mxu1  ;;  %v3306_v16 = vld [vmem:[#allocation8 + $0x40] sm:$0xff]  }
 0x86b   :  { %v1871_v19 = vmax.f32 %v1841_v18, 0.0  ;;  %v1844_v20 = vadd.f32 %v1843_v39, %v1733_v14 }
 0x86c   :  { %v1874_v21 = vmax.f32 %v1852_v36, 0.0 }
 0x86d   :  { %v1872_v7 = vmax.f32 %v1844_v20, 0.0 }
 0x86e   :  { %v1880_v22 = vpack.c.bf16 %v1874_v21, %v1873_v37 }
 0x86f   :  { %v1879_v23 = vpack.c.bf16 %v1872_v7, %v1871_v19  ;;  %v2981_v25 = vpop.f32.mrb[60].mxu1 }
 0x870   :  { %v1865_v26 = vadd.f32 %v2981_v25, %v1733_v14  ;;  %v1856_v27 = vpop.f32.mrb[61].mxu1 }
 0x871   :  { %2999 = vmatprep.mubr.bf16.mxu0 %v1879_v23  ;;  %v1857_v28 = vadd.f32 %v1856_v27, %v1733_v14  ;;  %v2982_v29 = vpop.f32.mrb[62].mxu1 }
 0x872   :  { %3000 = vmatmul.mubr.bf16.vlgmr.msra.gmra.mrb[40].mxu0 %v1880_v22  ;;  %v1877_v30 = vmax.f32 %v1865_v26, 0.0  ;;  %v1868_v31 = vadd.f32 %v2982_v29, %v1733_v14  ;;  %v1859_v32 = vpop.f32.mrb[63].mxu1 }
 0x873   :  { %3036 = vmatpush3.bf16.msra.mxu0 %v3298_v24  ;;  %v1875_v34 = vmax.f32 %v1857_v28, 0.0  ;;  %v1860_v35 = vadd.f32 %v1859_v32, %v1733_v14 }
 0x874   :  { %3037 = vmatprep.subr.bf16.mxu0 %v3439_v8  ;;  %v1878_v38 = vmax.f32 %v1868_v31, 0.0 }
 0x875   :  { %v1876_v40 = vmax.f32 %v1860_v35, 0.0  ;;  %v3309_v35 = vld [vmem:[#allocation8 + $0x58] sm:$0xff]  }
 0x876   :  { %v1882_v41 = vpack.c.bf16 %v1878_v38, %v1877_v30  ;;  %v1899_v38 = vld [vmem:[#allocation5 + $0xb0] ss:$0 sm:$0xff] }
 0x877   :  { %3038 = vmatpush3.bf16.msra.mxu0 %v3299_v33  ;;  %v1881_v43 = vpack.c.bf16 %v1876_v40, %v1875_v34  ;;  %v3307_v33 = vld [vmem:[#allocation8 + $0x48] sm:$0xff]   ;;  %v3308_v34 = vld [vmem:[#allocation8 + $0x50] sm:$0xff]  }
 0x878   :  { %3039 = vmatprep.subr.bf16.mxu0 %v3439_v8 }
 0x879   :  { %3003 = vmatprep.mubr.bf16.mxu0 %v1881_v43 }
 0x87a   :  { %3004 = vmatmul.mubr.bf16.gmra.mrb[44].mxu0 %v1882_v41 }
 0x87b   :  { %3040 = vmatpush3.bf16.msra.mxu0 %v3300_v42  ;;  %3051 = vmatprep.mubr.msk.bf16.mxu0 %vm3440_vm1, %v3439_v8 }
 0x87c   :  { %3041 = vmatprep.subr.bf16.mxu0 %v3439_v8 }
 0x87f   :  { %3042 = vmatpush3.bf16.msra.mxu0 %v3301_v44 }
 0x880   :  { %3043 = vmatprep.subr.bf16.mxu0 %v3439_v8 }
 0x883   :  { %3044 = vmatpush3.bf16.msra.mxu0 %v3302_v46 }
 0x884   :  { %3045 = vmatprep.subr.bf16.mxu0 %v3439_v8 }
 0x887   :  { %3046 = vmatpush3.bf16.msra.mxu0 %v3303_v47 }
 0x888   :  { %3047 = vmatprep.subr.bf16.mxu0 %v3439_v8 }
 0x88b   :  { %3048 = vmatpush3.bf16.msra.mxu0 %v3304_v48 }
 0x88c   :  { %3049 = vmatprep.subr.bf16.mxu0 %v3439_v8 }
 0x88f   :  { %3050 = vmatpush3.bf16.msra.mxu0 %v3305_v50 }
 0x921   :  { %v2115_v52 = vpop.f32.mrb[64].mxu1 }
 0x922   :  { %v2116_v53 = vadd.f32 %v2115_v52, %v2032_v51  ;;  %v3025_v54 = vpop.f32.mrb[65].mxu1 }
 0x923   :  { %v2118_v55 = vpop.f32.mrb[66].mxu1 }
 0x924   :  { %v2119_v56 = vadd.f32 %v2118_v55, %v2032_v51  ;;  %v3026_v58 = vpop.f32.mrb[67].mxu1  ;;  %v2138_v0 = vmax.f32 %v2116_v53, 0.0 }
 0x926   :  { %v2139_v60 = vmax.f32 %v2119_v56, 0.0 }
 0x928   :  { %v2144_v61 = vpack.c.bf16 %v2139_v60, %v2138_v0 }
 0x929   :  { %v2123_v62 = vpop.f32.mrb[68].mxu1 }
 0x92a   :  { %v2124_v63 = vadd.f32 %v2123_v62, %v2032_v51  ;;  %v3029_v45 = vpop.f32.mrb[69].mxu1  ;;  %3052 = vmatmul.mubr.bf16.vlgmr.msra.gmra.mrb[48].mxu0 %v2144_v61 }
 0x92b   :  { %v2126_v1 = vpop.f32.mrb[70].mxu1  ;;  %3055 = vmatprep.mubr.msk.bf16.mxu0 %vm3440_vm1, %v3439_v8 }
 0x92c   :  { %v2127_v2 = vadd.f32 %v2126_v1, %v2032_v51  ;;  %v3030_v49 = vpop.f32.mrb[71].mxu1  ;;  %v2140_v3 = vmax.f32 %v2124_v63, 0.0 }
 0x92e   :  { %v2141_v5 = vmax.f32 %v2127_v2, 0.0 }
 0x930   :  { %v2145_v6 = vpack.c.bf16 %v2141_v5, %v2140_v3 }
 0x931   :  { %v2131_v57 = vpop.f32.mrb[72].mxu1 }
 0x932   :  { %v2132_v9 = vadd.f32 %v2131_v57, %v2032_v51  ;;  %v3033_v10 = vpop.f32.mrb[73].mxu1  ;;  %3056 = vmatmul.mubr.bf16.gmra.mrb[52].mxu0 %v2145_v6 }
 0x933   :  { %v2134_v11 = vpop.f32.mrb[74].mxu1  ;;  %3059 = vmatprep.mubr.msk.bf16.mxu0 %vm3440_vm1, %v3439_v8 }
 0x934   :  { %v2135_v12 = vadd.f32 %v2134_v11, %v2032_v51  ;;  %v3034_v59 = vpop.f32.mrb[75].mxu1  ;;  %v2142_v13 = vmax.f32 %v2132_v9, 0.0 }
 0x936   :  { %v2143_v14 = vmax.f32 %v2135_v12, 0.0 }
 0x938   :  { %v2146_v15 = vpack.c.bf16 %v2143_v14, %v2142_v13 }
 0x93a   :  { %3060 = vmatmul.mubr.bf16.gmra.mrb[56].mxu0 %v2146_v15 }
 0x93b   :  { %3069 = vmatprep.mubr.msk.bf16.mxu0 %vm1636_vm2, %v3306_v16 }
 0x9fd   :  { %v2246_v18 = vpop.f32.mrb[48].mxu0 }
 0x9fe   :  { %v3053_v4 = vpop.f32.mrb[49].mxu0  ;;  %v2247_v36 = vadd.f32 %v2246_v18, %v2163_v17 }
 0x9ff   :  { %v2249_v37 = vpop.f32.mrb[50].mxu0 }
 0xa00   :  { %v2250_v39 = vadd.f32 %v2249_v37, %v2163_v17  ;;  %v3054_v19 = vpop.f32.mrb[51].mxu0 }
 0xa02   :  { %v2277_v20 = vpack.c.bf16 %v2250_v39, %v2247_v36 }
 0xa04   :  { %3063 = vmatprep.subr.bf16.mxu0 %v2277_v20 }
 0xa05   :  { %v2254_v21 = vpop.f32.mrb[52].mxu0  ;;  %3064 = vmatpush3.bf16.msra.mxu0 %v2277_v20 }
 0xa06   :  { %v3057_v8 = vpop.f32.mrb[53].mxu0  ;;  %v2255_v22 = vadd.f32 %v2254_v21, %v2163_v17 }
 0xa07   :  { %v2257_v7 = vpop.f32.mrb[54].mxu0 }
 0xa08   :  { %v2258_v23 = vadd.f32 %v2257_v7, %v2163_v17  ;;  %v3058_v24 = vpop.f32.mrb[55].mxu0 }
 0xa0a   :  { %v2278_v25 = vpack.c.bf16 %v2258_v23, %v2255_v22 }
 0xa0c   :  { %3065 = vmatprep.subr.bf16.mxu0 %v2278_v25 }
 0xa0d   :  { %v2262_v26 = vpop.f32.mrb[56].mxu0  ;;  %3066 = vmatpush3.bf16.msra.mxu0 %v2278_v25 }
 0xa0e   :  { %v3061_v27 = vpop.f32.mrb[57].mxu0  ;;  %v2263_v29 = vadd.f32 %v2262_v26, %v2163_v17 }
 0xa0f   :  { %v2265_v28 = vpop.f32.mrb[58].mxu0 }
 0xa10   :  { %v2266_v30 = vadd.f32 %v2265_v28, %v2163_v17  ;;  %v3062_v31 = vpop.f32.mrb[59].mxu0 }
 0xa12   :  { %v2279_v32 = vpack.c.bf16 %v2266_v30, %v2263_v29 }
 0xa14   :  { %3067 = vmatprep.subr.bf16.mxu0 %v2279_v32 }
 0xa15   :  { %3068 = vmatpush3.bf16.msra.mxu0 %v2279_v32 }
 0xa18   :  { %3070 = vmatmul.mubr.msk.bf16.vlgmr.msra.gmra.mrb[40].mxu0 %vm1636_vm2, %v3307_v33 }
 0xa19   :  { %3073 = vmatprep.mubr.msk.bf16.mxu0 %vm1636_vm2, %v3308_v34 }
 0xa20   :  { %3074 = vmatmul.mubr.msk.bf16.gmra.mrb[44].mxu0 %vm1636_vm2, %v3309_v35 }
 0xaeb   :  { %v3071_v40 = vpop.f32.mrb[40].mxu0 }
 0xaec   :  { %v3099_v41 = vadd.f32 %v3071_v40, %v1899_v38  ;;  %v2346_v42 = vpop.f32.mrb[41].mxu0 }
 0xaed   :  { %v3100_v43 = vadd.f32 %v2346_v42, %v1899_v38  ;;  %v3072_v44 = vpop.f32.mrb[42].mxu0 }
 0xaee   :  { %2387 = vst [vmem:[#allocation10 + $0x10] sm:$0xff] %v3099_v41  ;;  %v3101_v46 = vadd.f32 %v3072_v44, %v1899_v38  ;;  %v2349_v47 = vpop.f32.mrb[43].mxu0 }
 0xaef   :  { %2385 = vst [vmem:[#allocation10] sm:$0xff] %v3100_v43  ;;  %v3102_v48 = vadd.f32 %v2349_v47, %v1899_v38 }
 0xaf0   :  { %2388 = vst [vmem:[#allocation10 + $0x18] sm:$0xff] %v3101_v46 }
 0xaf1   :  { %2386 = vst [vmem:[#allocation10 + $0x8] sm:$0xff] %v3102_v48 }
 0xaf3   :  { %v3075_v50 = vpop.f32.mrb[44].mxu0 }
 0xaf4   :  { %v3103_v51 = vadd.f32 %v3075_v50, %v1899_v38  ;;  %v2362_v52 = vpop.f32.mrb[45].mxu0 }
 0xaf5   :  { %v3104_v53 = vadd.f32 %v2362_v52, %v1899_v38  ;;  %v3076_v54 = vpop.f32.mrb[46].mxu0 }
 0xaf6   :  { %2391 = vst [vmem:[#allocation10 + $0x30] sm:$0xff] %v3103_v51  ;;  %v3105_v55 = vadd.f32 %v3076_v54, %v1899_v38  ;;  %v2365_v56 = vpop.f32.mrb[47].mxu0 }
 0xaf7   :  { %2389 = vst [vmem:[#allocation10 + $0x20] sm:$0xff] %v3104_v53  ;;  %v3106_v58 = vadd.f32 %v2365_v56, %v1899_v38 }
 0xaf8   :  { %2392 = vst [vmem:[#allocation10 + $0x38] sm:$0xff] %v3105_v55 }
 0xaf9   :  { %2390 = vst [vmem:[#allocation10 + $0x28] sm:$0xff] %v3106_v58 }
 0xafa   :  { %3409 = shalt.err (!%p3406_p8)
}
 0xafb   :  { %s3410_s19 = scalar_lea.hbm %s3685_s4, 1024 }
 0xafc   :  { %p3411_p9 = scmp.ne.s32.totalorder %s3685_s4, %s3410_s19  ;;  %p3414_p10 = scmp.lt.u32.totalorder %s3410_s19, %s3685_s4 }
 0xafe   :  { %p3416_p11 = pnand %p3414_p10, %p3411_p9 }
 0xb00   :  { %3419 = shalt.err (!%p3416_p11)
}
 0xb01   :  { %2404 = dma.vmem_to_hbm [thread:$0]  %s2399_s15, 1024, %s3685_s4, [#allocation4], %s3432_s1, %s3432_s1, %s3433_s13  }
 0xb02   :  { %3426 = dma.done.wait [#allocation4], 1024  }
 0xb03   :  { %3427 = vsyncadd [#allocation4], 4294966272 }
 0xb04   :  { %2408 = vsyncpa [#allocation3], 1 }
 0xb05   :  { %2409 = vsyncpa [#allocation6], 1 }
 0xb06   :  { %2410 = vsyncpa [#allocation9], 1 }
 0xb07   :  { %2411 = vsyncpa [#allocation4], 1 }

</bundles_post_ra>
